<compile_context>
chip_gen: v7x
topology: tpu7x:2x2x1
jax: 0.10.0
libtpu: 0.0.40
codegen_flags: <defaults>
</compile_context>

<pallas_src>
import functools

import jax
import jax.numpy as jnp
import numpy as np
from jax.experimental import pallas as pl
from jax.experimental.pallas import tpu as pltpu

IN_RAW_CH = 15      # raw per-point channel count (center, ox, oy, oz, norm)
IN_USED_CH = 3      # spatial_mlp consumes channels 0:3
OUT_CH = 64
BN_EPS = 1e-5


# ----------------------------------------------------------------------------
# Pallas kernel: fused 2-layer per-point MLP, channels-first inside the kernel
# ----------------------------------------------------------------------------
def _pointconv_kernel(x_ref, w1_ref, b1_ref, w2_ref, b2_ref, o_ref):
    x = x_ref[0]                                   # (tn, 15) f32 channels-last rows
    xt = x.T                                       # (15, tn) small input-side transpose (XLU)

    # Layer 1: Conv1d(3,64,1)+BN+ReLU.  Channel selection (0:3) is folded into
    # the zero-padded (64, 15) bf16 weight.  (64,15)bf16 @ (15,tn)bf16 -> f32.
    h = jnp.dot(w1_ref[...], xt.astype(jnp.bfloat16),
                preferred_element_type=jnp.float32)          # (64, tn)
    h = jnp.maximum(h + b1_ref[...], 0.0)                    # f32 bias + ReLU

    # Layer 2: Conv1d(64,64,1)+BN+ReLU.  (64,64)bf16 @ (64,tn)bf16 -> f32.
    h = jnp.dot(w2_ref[...], h.astype(jnp.bfloat16),
                preferred_element_type=jnp.float32)          # (64, tn)
    h = jnp.maximum(h + b2_ref[...], 0.0)

    # Already in PyTorch (B, 64, N) layout; lane-dense unmasked store.
    o_ref[0] = h.astype(o_ref.dtype)


def _choose_tn(n_pad, tn_max, force_multi):
    """Largest 128-multiple tile that divides n_pad (so zero per-tile waste).

    If force_multi, keep >= 2 tiles when possible so both v7x TensorCores
    get work even when the batch axis is 1.
    """
    m = n_pad // 128
    best = 1
    for d in range(1, m + 1):
        if m % d:
            continue
        if d * 128 > tn_max:
            continue
        if force_multi and m >= 2 and (m // d) < 2:
            continue
        best = max(best, d)
    return best * 128


def _pointconv_pallas(rows, w1, b1, w2, b2, *, tn_max=2048, out_dtype=jnp.float32):
    """rows: (B, N, 15) channels-last f32; returns (B, 64, N) out_dtype."""
    B, N, C = rows.shape

    # Pad only to the next multiple of 128 (keeps stores unmasked, minimal waste).
    n_pad = pl.cdiv(N, 128) * 128
    if n_pad != N:
        rows = jnp.pad(rows, ((0, 0), (0, n_pad - N), (0, 0)))

    tn = _choose_tn(n_pad, tn_max, force_multi=(B == 1))
    nj = n_pad // tn

    out = pl.pallas_call(
        _pointconv_kernel,
        out_shape=jax.ShapeDtypeStruct((B, OUT_CH, n_pad), out_dtype),
        grid_spec=pltpu.PrefetchScalarGridSpec(
            num_scalar_prefetch=0,
            grid=(B, nj),
            in_specs=[
                pl.BlockSpec((1, tn, C), lambda b, j: (b, j, 0)),
                pl.BlockSpec(w1.shape, lambda b, j: (0, 0)),
                pl.BlockSpec(b1.shape, lambda b, j: (0, 0)),
                pl.BlockSpec(w2.shape, lambda b, j: (0, 0)),
                pl.BlockSpec(b2.shape, lambda b, j: (0, 0)),
            ],
            out_specs=pl.BlockSpec((1, OUT_CH, tn), lambda b, j: (b, 0, j)),
        ),
        compiler_params=pltpu.CompilerParams(
            dimension_semantics=("parallel", "parallel")),
    )(rows, w1, b1, w2, b2)

    # Padded columns hold ReLU(bias) garbage; slice them off (only if padded).
    return out if n_pad == N else out[:, :, :N]


# ----------------------------------------------------------------------------
# Parameter construction (deterministic) and BN folding (plain JAX glue)
# ----------------------------------------------------------------------------
def _make_layer_params(key, c_in, c_out):
    k = jax.random.split(key, 6)
    w = jax.random.normal(k[0], (c_out, c_in), jnp.float32) * 0.1   # Conv1d weight (k=1)
    b = jax.random.normal(k[1], (c_out,), jnp.float32) * 0.1        # Conv1d bias
    gamma = 1.0 + 0.1 * jax.random.normal(k[2], (c_out,), jnp.float32)
    beta = 0.1 * jax.random.normal(k[3], (c_out,), jnp.float32)
    mean = 0.1 * jax.random.normal(k[4], (c_out,), jnp.float32)
    var = jax.random.uniform(k[5], (c_out,), jnp.float32, 0.5, 1.5)
    return dict(w=w, b=b, gamma=gamma, beta=beta, mean=mean, var=var)


def _fold_bn_cf(p, pad_in_to=None, w_dtype=jnp.bfloat16):
    """Fold Conv1d(k=1)+BatchNorm1d(eval) into y = Wf @ x + bf (channels first).

    Returns Wf as (C_out, C_in) in `w_dtype` (bf16 MXU operand) and bf as
    (C_out, 1) f32.  pad_in_to: zero-pad the input-channel axis of Wf to this
    size (folds the 'use only the first C_in channels' slice into the matmul).
    """
    scale = p["gamma"] / jnp.sqrt(p["var"] + BN_EPS)                # (C_out,)
    wf = p["w"] * scale[:, None]                                    # (C_out, C_in)
    bf = (p["b"] - p["mean"]) * scale + p["beta"]                   # (C_out,)
    if pad_in_to is not None and pad_in_to > wf.shape[1]:
        wf = jnp.pad(wf, ((0, 0), (0, pad_in_to - wf.shape[1])))
    return wf.astype(w_dtype), bf.reshape(-1, 1).astype(jnp.float32)


def make_params(key):
    ks = jax.random.split(key, 2)
    return [
        _make_layer_params(ks[0], IN_USED_CH, OUT_CH),   # Conv1d(3, 64, 1) + BN
        _make_layer_params(ks[1], OUT_CH, OUT_CH),       # Conv1d(64, 64, 1) + BN
    ]


# ----------------------------------------------------------------------------
# Forward wrapper (reproduces the PyTorch view/transpose/slice semantics)
# ----------------------------------------------------------------------------
@functools.partial(jax.jit, static_argnames=("batch_size",))
def point_conv(x, params, *, batch_size):
    # x.view(B, -1, 15) is already channels-last (B, N, 15); no wrapper transpose.
    rows = x.reshape(batch_size, -1, IN_RAW_CH).astype(jnp.float32)   # (B, N, 15)
    w1, b1 = _fold_bn_cf(params[0], pad_in_to=IN_RAW_CH)              # (64, 15) bf16, (64, 1) f32
    w2, b2 = _fold_bn_cf(params[1])                                   # (64, 64) bf16, (64, 1) f32
    return _pointconv_pallas(rows, w1, b1, w2, b2)                    # (B, 64, N) f32


# ----------------------------------------------------------------------------
# Pure-JAX reference (mirrors the PyTorch module, for correctness check)
# ----------------------------------------------------------------------------
def point_conv_ref(x, params, *, batch_size):
    data = x.reshape(batch_size, -1, IN_RAW_CH).transpose(0, 2, 1)    # (B, 15, N)
    a = data[:, :IN_USED_CH]                                          # (B, 3, N)

    def layer(a, p):   # a: (B, C_in, N)
        out = jnp.einsum("oi,bin->bon", p["w"], a) + p["b"][None, :, None]
        scale = p["gamma"] / jnp.sqrt(p["var"] + BN_EPS)
        out = (out - p["mean"][None, :, None]) * scale[None, :, None] + p["beta"][None, :, None]
        return jnp.maximum(out, 0.0)

    return layer(layer(a, params[0]), params[1])


if __name__ == "__main__":
    key = jax.random.PRNGKey(0)
    kx, kp, kx2 = jax.random.split(key, 3)
    params = make_params(kp)

    # bf16 MXU operands => looser tolerance than the pure-f32 version.
    TOL = dict(rtol=2e-2, atol=2e-2)

    # Case 1: 128-aligned N (no pad/slice path).  x: (B*15, N) so that
    # x.view(B, -1, 15) -> (B, N, 15).
    B, N = 2, 1024
    x = jax.random.normal(kx, (B * IN_RAW_CH, N), jnp.float32)
    out = jax.block_until_ready(point_conv(x, params, batch_size=B))
    ref = point_conv_ref(x, params, batch_size=B)
    assert out.shape == (B, OUT_CH, N), out.shape
    np.testing.assert_allclose(np.asarray(out), np.asarray(ref), **TOL)

    # Case 2: ragged N (exercises the minimal 128-pad + output slice path).
    B2, N2 = 2, 1000
    x2 = jax.random.normal(kx2, (B2 * IN_RAW_CH, N2), jnp.float32)
    out2 = jax.block_until_ready(point_conv(x2, params, batch_size=B2))
    ref2 = point_conv_ref(x2, params, batch_size=B2)
    assert out2.shape == (B2, OUT_CH, N2), out2.shape
    np.testing.assert_allclose(np.asarray(out2), np.asarray(ref2), **TOL)

    print("KERNEL_OK")
</pallas_src>

<mosaic_0001>
module attributes {stable_mosaic.version = 11 : i64} {
  func.func @_pointconv_kernel(%arg0: i32, %arg1: i32, %arg2: memref<1x1024x15xf32, #tpu.memory_space<vmem>>, %arg3: memref<64x15xbf16, #tpu.memory_space<vmem>>, %arg4: memref<64x1xf32, #tpu.memory_space<vmem>>, %arg5: memref<64x64xbf16, #tpu.memory_space<vmem>>, %arg6: memref<64x1xf32, #tpu.memory_space<vmem>>, %arg7: memref<1x64x1024xf32, #tpu.memory_space<vmem>>) attributes {dimension_semantics = [#tpu.dimension_semantics<parallel>, #tpu.dimension_semantics<parallel>], iteration_bounds = array<i64: 2, 1>, scalar_prefetch = 0 : i64, scratch_operands = 0 : i64, tpu.core_type = #tpu.core_type<tc>, window_params = [{transform_indices = @transform_0, window_bounds = array<i64: 1, 1024, 15>}, {pipeline_mode = #tpu.pipeline_mode<synchronous>, transform_indices = @transform_1, window_bounds = array<i64: 64, 15>}, {pipeline_mode = #tpu.pipeline_mode<synchronous>, transform_indices = @transform_2, window_bounds = array<i64: 64, 1>}, {pipeline_mode = #tpu.pipeline_mode<synchronous>, transform_indices = @transform_3, window_bounds = array<i64: 64, 64>}, {pipeline_mode = #tpu.pipeline_mode<synchronous>, transform_indices = @transform_4, window_bounds = array<i64: 64, 1>}, {transform_indices = @transform_5, window_bounds = array<i64: 1, 64, 1024>}]} {
    %c0 = arith.constant 0 : index
    %c0_0 = arith.constant 0 : index
    %c0_1 = arith.constant 0 : index
    %0 = vector.load %arg2[%c0, %c0_0, %c0_1] : memref<1x1024x15xf32, #tpu.memory_space<vmem>>, vector<1x1024x15xf32>
    %1 = vector.shape_cast %0 : vector<1x1024x15xf32> to vector<1024x15xf32>
    %2 = tpu.transpose %1, [1, 0] : vector<1024x15xf32> -> vector<15x1024xf32>
    %c0_2 = arith.constant 0 : index
    %c0_3 = arith.constant 0 : index
    %3 = vector.load %arg3[%c0_2, %c0_3] : memref<64x15xbf16, #tpu.memory_space<vmem>>, vector<64x15xbf16>
    %4 = arith.truncf %2 : vector<15x1024xf32> to vector<15x1024xbf16>
    %cst = arith.constant dense<0.000000e+00> : vector<64x1024xf32>
    %5 = tpu.matmul %3, %4, %cst {dimension_numbers = #tpu.dot_dimension_numbers<[1], [0], [0], [1], [0, 0, 1, 1], [], []>} : vector<64x15xbf16>, vector<15x1024xbf16>, vector<64x1024xf32> -> vector<64x1024xf32>
    %c0_4 = arith.constant 0 : index
    %c0_5 = arith.constant 0 : index
    %6 = vector.load %arg4[%c0_4, %c0_5] : memref<64x1xf32, #tpu.memory_space<vmem>>, vector<64x1xf32>
    %7 = vector.broadcast %6 : vector<64x1xf32> to vector<64x1024xf32>
    %8 = arith.addf %5, %7 : vector<64x1024xf32>
    %cst_6 = arith.constant 0.000000e+00 : f32
    %9 = vector.broadcast %cst_6 : f32 to vector<64x1024xf32>
    %10 = arith.maximumf %8, %9 : vector<64x1024xf32>
    %c0_7 = arith.constant 0 : index
    %c0_8 = arith.constant 0 : index
    %11 = vector.load %arg5[%c0_7, %c0_8] : memref<64x64xbf16, #tpu.memory_space<vmem>>, vector<64x64xbf16>
    %12 = arith.truncf %10 : vector<64x1024xf32> to vector<64x1024xbf16>
    %cst_9 = arith.constant dense<0.000000e+00> : vector<64x1024xf32>
    %13 = tpu.matmul %11, %12, %cst_9 {dimension_numbers = #tpu.dot_dimension_numbers<[1], [0], [0], [1], [0, 0, 1, 1], [], []>} : vector<64x64xbf16>, vector<64x1024xbf16>, vector<64x1024xf32> -> vector<64x1024xf32>
    %c0_10 = arith.constant 0 : index
    %c0_11 = arith.constant 0 : index
    %14 = vector.load %arg6[%c0_10, %c0_11] : memref<64x1xf32, #tpu.memory_space<vmem>>, vector<64x1xf32>
    %15 = vector.broadcast %14 : vector<64x1xf32> to vector<64x1024xf32>
    %16 = arith.addf %13, %15 : vector<64x1024xf32>
    %cst_12 = arith.constant 0.000000e+00 : f32
    %17 = vector.broadcast %cst_12 : f32 to vector<64x1024xf32>
    %18 = arith.maximumf %16, %17 : vector<64x1024xf32>
    %c0_13 = arith.constant 0 : index
    %c0_14 = arith.constant 0 : index
    %c0_15 = arith.constant 0 : index
    %19 = vector.load %arg7[%c0_13, %c0_14, %c0_15] : memref<1x64x1024xf32, #tpu.memory_space<vmem>>, vector<1x64x1024xf32>
    %20 = vector.shape_cast %19 : vector<1x64x1024xf32> to vector<64x1024xf32>
    %21 = vector.shape_cast %18 : vector<64x1024xf32> to vector<1x64x1024xf32>
    tpu.vector_store %arg7[%c0_13, %c0_14, %c0_15], %21 {strides = array<i32>} : memref<1x64x1024xf32, #tpu.memory_space<vmem>>, vector<1x64x1024xf32>,
    return
  }
  func.func @transform_0(%arg0: i32, %arg1: i32) -> (i32, i32, i32) {
    %c0_i32 = arith.constant 0 : i32
    %c0_i32_0 = arith.constant 0 : i32
    return %arg0, %arg1, %c0_i32 : i32, i32, i32
  }
  func.func @transform_1(%arg0: i32, %arg1: i32) -> (i32, i32) {
    %c0_i32 = arith.constant 0 : i32
    %c0_i32_0 = arith.constant 0 : i32
    %c0_i32_1 = arith.constant 0 : i32
    return %c0_i32, %c0_i32_0 : i32, i32
  }
  func.func @transform_2(%arg0: i32, %arg1: i32) -> (i32, i32) {
    %c0_i32 = arith.constant 0 : i32
    %c0_i32_0 = arith.constant 0 : i32
    %c0_i32_1 = arith.constant 0 : i32
    return %c0_i32, %c0_i32_0 : i32, i32
  }
  func.func @transform_3(%arg0: i32, %arg1: i32) -> (i32, i32) {
    %c0_i32 = arith.constant 0 : i32
    %c0_i32_0 = arith.constant 0 : i32
    %c0_i32_1 = arith.constant 0 : i32
    return %c0_i32, %c0_i32_0 : i32, i32
  }
  func.func @transform_4(%arg0: i32, %arg1: i32) -> (i32, i32) {
    %c0_i32 = arith.constant 0 : i32
    %c0_i32_0 = arith.constant 0 : i32
    %c0_i32_1 = arith.constant 0 : i32
    return %c0_i32, %c0_i32_0 : i32, i32
  }
  func.func @transform_5(%arg0: i32, %arg1: i32) -> (i32, i32, i32) {
    %c0_i32 = arith.constant 0 : i32
    %c0_i32_0 = arith.constant 0 : i32
    return %arg0, %c0_i32, %arg1 : i32, i32, i32
  }
}

</mosaic_0001>

<bundles_post_ra>
// kernel: point_conv.1
= control target key start
LH: loop header
LB: loop body
LE: loop exit
PB: predicated region body
PF: predicated region fallthrough
CT: control target
= control target key end

     0   :  { %10 = vsyncpa [#allocation3], 0  ;;  %s2835_s0 = inlined_call_operand.vmem [shape: f32[2,1024,15], index: 0, kind: input, shape index: {}]   ;;  %s2836_s1 = inlined_call_operand.vmem [shape: bf16[64,15], index: 1, kind: input, shape index: {}]   ;;  %s2837_s2 = inlined_call_operand.vmem [shape: f32[64,1], index: 2, kind: input, shape index: {}]   ;;  %s2838_s3 = inlined_call_operand.vmem [shape: bf16[64,64], index: 3, kind: input, shape index: {}]   ;;  %s2839_s4 = inlined_call_operand.vmem [shape: f32[64,1], index: 4, kind: input, shape index: {}]   ;;  %s2840_s5 = inlined_call_operand.hbm [shape: f32[2,64,1024], index: 5, kind: output, shape index: {}]  }
   0x1   :  { %12 = vsyncpa [#allocation3 + $0x1], 0  ;;  %s2163_s18 = smov 0   ;;  %s2165_s19 = smov 0  }
   0x2   :  { %s2167_s20 = smov 0   ;;  %s2169_s21 = smov 0  }
   0x3   :  { %s2171_s22 = smov 0   ;;  %s2173_s23 = smov 0  }
   0x4 LB: > { %s1756_s24 = sadd.s32 4294967295, %s2126_s23   ;;  %s1757_s25 = sadd.s32 4294967294, %s2126_s23   ;;  %s2126_s23 = sphi %s2173_s23, %s18_s23   ;;  %s2122_s22 = sphi %s2171_s22, %s2847_s22   ;;  %s2118_s21 = sphi %s2169_s21, %s2846_s21   ;;  %s2114_s20 = sphi %s2167_s20, %s2845_s20   ;;  %s2110_s19 = sphi %s2165_s19, %s2844_s19   ;;  %s2106_s18 = sphi %s2163_s18, %s2843_s18  }
   0x5   : > { %s30_s26 = sadd.s32 1, %s2122_s22  ;;  %s151_s27 = sadd.s32 1, %s2114_s20 }
   0x6   : > { %p32_p0 = scmp.ge.s32.totalorder %s30_s26, 2  ;;  %p161_p1 = scmp.ne.s32.totalorder %s2114_s20, %s2110_s19 }
   0x7   : > { %p162_p2 = scmp.eq.s32.totalorder %s1756_s24, 1  ;;  %p167_p3 = scmp.ne.s32.totalorder %s2110_s19, %s2106_s18 }
   0x8   : > { %s2849_s26 = smov (%p32_p0, %s30_s26), 0  ;;  %p168_p5 = scmp.eq.s32.totalorder %s1757_s25, 1 }
   0x9   : > { %p2203_p4 = por %p162_p2, %p161_p1  ;;  %s146_s29 = ssub.s32 %s2122_s22, %s2849_s26 }
   0xa   : > { %p1760_p6 = scmp.ge.s32.totalorder %s2126_s23, 1  ;;  %p149_p7 = scmp.eq.s32.totalorder %s146_s29, 0 }
   0xb   : > { %p2210_p8 = por %p168_p5, %p167_p3  ;;  %p211_p9 = scmp.lt.s32.totalorder %s2126_s23, 3 }
   0xc   : > { %s2216_s6 = scalar_select %p149_p7, %s2114_s20, %s151_s27  }
   0xd   : > { %p212_p10 = pnand %p1760_p6, %p211_p9 }
   0xe   : > { %p244_p11 = scmp.lt.s32.totalorder (!%p212_p10), %s2118_s21, 1  ;;  %v2128_v32 = vmov (!%p212_p10), 0   ;;  %vm736_vm0 = vcmask (!%p212_p10), 1046528   ;;  %vm737_vm1 = vcmask (!%p212_p10), 1047552   ;;  %vm723_vm2 = vcmask (!%p212_p10), 121856   ;;  %s240_s15 = sand.u32 (!%p212_p10), 1, %s2110_s19  }
   0xf   : > { %215 = sbr.rel (%p212_p10) target bundleno = 745 (0x2e9), region = 40  ;;  %796 = vmatprep.mubr.bf16.mxu0 (!%p212_p10), %v2128_v32  ;;  %869 = vmatprep.mubr.bf16.mxu1 (!%p212_p10), %v2128_v32  ;;  %vm1228_vm3 = vcmask (!%p212_p10), 523264   ;;  %s1761_s16 = sshll.u32 (!%p212_p10), %s240_s15, 9 }
  0x10   : > { %s2644_s17 = scalar_lea.vmem (!%p212_p10), [#allocation2], %s1761_s16  ;;  %s1810_s24 = sshll.u32 (!%p212_p10), %s2118_s21, 13 }
  0x11   : > { %s1677_s25 = sshll.u32 (!%p212_p10), %s2644_s17, 4  ;;  %s2777_s29 = scalar_lea.hbm (!%p212_p10), %s2840_s5, %s1810_s24  ;;  %s2779_s25 = int_to_ptr.vmem [resolvable:$true] %s1677_s25 }
  0x12   : > { %s2130_s9 = smov (!%p212_p10), [#allocation2]  }
  0x13   : > { %s2052_s10 = sshll.u32 (!%p212_p10), %s2130_s9, 4  ;;  %s2053_s10 = int_to_ptr.vmem [resolvable:$false] %s2052_s10 }
  0x14   : > { %p2055_p1 = scmp.lt.s32.totalorder (!%p212_p10), %s2779_s25, %s2053_s10 }
  0x16   : > { %s245_s7 = scalar_select %p244_p11, %s2118_s21, 1 }
  0x18   : > { %s1809_s8 = sshll.u32 %s245_s7, 10  ;;  %s2789_s7 = scalar_lea.sflag [#allocation3], %s240_s15 }
  0x19   : > { %s2223_s11 = scalar_lea.vmem %s2835_s0, %s1809_s8  ;;  %s2048_s8 = scalar_lea.vmem %s2779_s25, 8192 }
  0x1a   : > { %v271_v0 = vld [vmem:[%s2223_s11 + $0x80] sm:$0xff]  ;;  %v272_v5 = vld [vmem:[%s2223_s11 + $0x88] sm:$0xff]  ;;  %v273_v12 = vld [vmem:[%s2223_s11 + $0x90] sm:$0xff]  ;;  %p2049_p12 = scmp.ne.s32.totalorder %s2779_s25, %s2048_s8 }
  0x1b   : > { %v303_v1 = vld [vmem:[%s2223_s11 + $0x180] sm:$0xff]  ;;  %v304_v6 = vld [vmem:[%s2223_s11 + $0x188] sm:$0xff]  ;;  %v305_v13 = vld [vmem:[%s2223_s11 + $0x190] sm:$0xff] }
  0x1c   : > { %v255_v2 = vld [vmem:[%s2223_s11] sm:$0xff]  ;;  %v1870_v3 = vpack.i.bf16 %v303_v1, %v271_v0  ;;  %v256_v8 = vld [vmem:[%s2223_s11 + $0x8] sm:$0xff]  ;;  %v1872_v10 = vpack.i.bf16 %v304_v6, %v272_v5  ;;  %v257_v14 = vld [vmem:[%s2223_s11 + $0x10] sm:$0xff]  ;;  %v1874_v16 = vpack.i.bf16 %v305_v13, %v273_v12  ;;  %p2050_p13 = pnand %p2049_p12, %p2203_p4 }
  0x1d   : > { %v287_v4 = vld [vmem:[%s2223_s11 + $0x100] sm:$0xff]  ;;  %v288_v9 = vld [vmem:[%s2223_s11 + $0x108] sm:$0xff]  ;;  %v289_v15 = vld [vmem:[%s2223_s11 + $0x110] sm:$0xff] }
  0x1e   : > { %v1912_v7 = vpack.i.bf16 %v287_v4, %v255_v2  ;;  %1871 = vxpose.xlu0.b32.start [1/16] (narrow) %v1870_v3, 16  ;;  %v1914_v11 = vpack.i.bf16 %v288_v9, %v256_v8  ;;  %v1916_v17 = vpack.i.bf16 %v289_v15, %v257_v14  ;;  %v274_v18 = vld [vmem:[%s2223_s11 + $0x98] sm:$0xff]  ;;  %v275_v24 = vld [vmem:[%s2223_s11 + $0xa0] sm:$0xff]  ;;  %v276_v30 = vld [vmem:[%s2223_s11 + $0xa8] sm:$0xff]  ;;  %p2051_p0 = pneg %p2050_p13 }
  0x1f   : > { %v306_v19 = vld [vmem:[%s2223_s11 + $0x198] sm:$0xff]  ;;  %v307_v25 = vld [vmem:[%s2223_s11 + $0x1a0] sm:$0xff]  ;;  %v308_v31 = vld [vmem:[%s2223_s11 + $0x1a8] sm:$0xff] }
  0x20   : > { %1913 = vxpose.xlu1.b32.start [1/16] (narrow) %v1912_v7, 16  ;;  %v258_v20 = vld [vmem:[%s2223_s11 + $0x18] sm:$0xff]  ;;  %v1876_v22 = vpack.i.bf16 %v306_v19, %v274_v18  ;;  %v259_v26 = vld [vmem:[%s2223_s11 + $0x20] sm:$0xff]  ;;  %v1878_v28 = vpack.i.bf16 %v307_v25, %v275_v24  ;;  %v260_v33 = vld [vmem:[%s2223_s11 + $0x28] sm:$0xff]  ;;  %v1880_v35 = vpack.i.bf16 %v308_v31, %v276_v30 }
  0x21   : > { %v290_v21 = vld [vmem:[%s2223_s11 + $0x118] sm:$0xff]  ;;  %v291_v27 = vld [vmem:[%s2223_s11 + $0x120] sm:$0xff]  ;;  %v292_v34 = vld [vmem:[%s2223_s11 + $0x128] sm:$0xff] }
  0x22   : > { %1873 = vxpose.xlu0.b32.cont [2/16] (narrow) %v1872_v10, 16  ;;  %v1918_v23 = vpack.i.bf16 %v290_v21, %v258_v20  ;;  %v1920_v29 = vpack.i.bf16 %v291_v27, %v259_v26  ;;  %v1922_v36 = vpack.i.bf16 %v292_v34, %v260_v33  ;;  %v277_v37 = vld [vmem:[%s2223_s11 + $0xb0] sm:$0xff]  ;;  %v278_v43 = vld [vmem:[%s2223_s11 + $0xb8] sm:$0xff]  ;;  %v279_v49 = vld [vmem:[%s2223_s11 + $0xc0] sm:$0xff] }
  0x23   : > { %v309_v38 = vld [vmem:[%s2223_s11 + $0x1b0] sm:$0xff]  ;;  %v310_v44 = vld [vmem:[%s2223_s11 + $0x1b8] sm:$0xff]  ;;  %v311_v50 = vld [vmem:[%s2223_s11 + $0x1c0] sm:$0xff] }
  0x24   : > { %1915 = vxpose.xlu1.b32.cont [2/16] (narrow) %v1914_v11, 16  ;;  %v261_v39 = vld [vmem:[%s2223_s11 + $0x30] sm:$0xff]  ;;  %v1882_v41 = vpack.i.bf16 %v309_v38, %v277_v37  ;;  %v262_v45 = vld [vmem:[%s2223_s11 + $0x38] sm:$0xff]  ;;  %v1884_v47 = vpack.i.bf16 %v310_v44, %v278_v43  ;;  %v263_v51 = vld [vmem:[%s2223_s11 + $0x40] sm:$0xff]  ;;  %v1886_v53 = vpack.i.bf16 %v311_v50, %v279_v49 }
  0x25   : > { %v293_v40 = vld [vmem:[%s2223_s11 + $0x130] sm:$0xff]  ;;  %v294_v46 = vld [vmem:[%s2223_s11 + $0x138] sm:$0xff]  ;;  %v295_v52 = vld [vmem:[%s2223_s11 + $0x140] sm:$0xff] }
  0x26   : > { %1875 = vxpose.xlu0.b32.cont [3/16] (narrow) %v1874_v16, 16  ;;  %v1924_v42 = vpack.i.bf16 %v293_v40, %v261_v39  ;;  %v1926_v48 = vpack.i.bf16 %v294_v46, %v262_v45  ;;  %v1928_v54 = vpack.i.bf16 %v295_v52, %v263_v51  ;;  %v280_v55 = vld [vmem:[%s2223_s11 + $0xc8] sm:$0xff]  ;;  %v281_v61 = vld [vmem:[%s2223_s11 + $0xd0] sm:$0xff]  ;;  %v282_v3 = vld [vmem:[%s2223_s11 + $0xd8] sm:$0xff] }
  0x27   : > { %v312_v56 = vld [vmem:[%s2223_s11 + $0x1c8] sm:$0xff]  ;;  %v313_v62 = vld [vmem:[%s2223_s11 + $0x1d0] sm:$0xff]  ;;  %v314_v4 = vld [vmem:[%s2223_s11 + $0x1d8] sm:$0xff] }
  0x28   : > { %1917 = vxpose.xlu1.b32.cont [3/16] (narrow) %v1916_v17, 16  ;;  %v264_v57 = vld [vmem:[%s2223_s11 + $0x48] sm:$0xff]  ;;  %v1888_v59 = vpack.i.bf16 %v312_v56, %v280_v55  ;;  %v265_v63 = vld [vmem:[%s2223_s11 + $0x50] sm:$0xff]  ;;  %v1890_v1 = vpack.i.bf16 %v313_v62, %v281_v61  ;;  %v266_v5 = vld [vmem:[%s2223_s11 + $0x58] sm:$0xff]  ;;  %v1892_v7 = vpack.i.bf16 %v314_v4, %v282_v3 }
  0x29   : > { %v296_v58 = vld [vmem:[%s2223_s11 + $0x148] sm:$0xff]  ;;  %v297_v0 = vld [vmem:[%s2223_s11 + $0x150] sm:$0xff]  ;;  %v298_v6 = vld [vmem:[%s2223_s11 + $0x158] sm:$0xff] }
  0x2a   : > { %1877 = vxpose.xlu0.b32.cont [4/16] (narrow) %v1876_v22, 16  ;;  %v1930_v60 = vpack.i.bf16 %v296_v58, %v264_v57  ;;  %v1932_v2 = vpack.i.bf16 %v297_v0, %v265_v63  ;;  %v1934_v8 = vpack.i.bf16 %v298_v6, %v266_v5  ;;  %v283_v9 = vld [vmem:[%s2223_s11 + $0xe0] sm:$0xff]  ;;  %v284_v15 = vld [vmem:[%s2223_s11 + $0xe8] sm:$0xff]  ;;  %v285_v21 = vld [vmem:[%s2223_s11 + $0xf0] sm:$0xff] }
  0x2b   : > { %v315_v10 = vld [vmem:[%s2223_s11 + $0x1e0] sm:$0xff]  ;;  %v316_v16 = vld [vmem:[%s2223_s11 + $0x1e8] sm:$0xff]  ;;  %v317_v22 = vld [vmem:[%s2223_s11 + $0x1f0] sm:$0xff] }
  0x2c   : > { %1919 = vxpose.xlu1.b32.cont [4/16] (narrow) %v1918_v23, 16  ;;  %v267_v11 = vld [vmem:[%s2223_s11 + $0x60] sm:$0xff]  ;;  %v1894_v13 = vpack.i.bf16 %v315_v10, %v283_v9  ;;  %v268_v17 = vld [vmem:[%s2223_s11 + $0x68] sm:$0xff]  ;;  %v1896_v19 = vpack.i.bf16 %v316_v16, %v284_v15  ;;  %v269_v23 = vld [vmem:[%s2223_s11 + $0x70] sm:$0xff]  ;;  %v1898_v25 = vpack.i.bf16 %v317_v22, %v285_v21 }
  0x2d   : > { %v299_v12 = vld [vmem:[%s2223_s11 + $0x160] sm:$0xff]  ;;  %v300_v18 = vld [vmem:[%s2223_s11 + $0x168] sm:$0xff]  ;;  %v301_v24 = vld [vmem:[%s2223_s11 + $0x170] sm:$0xff] }
  0x2e   : > { %1879 = vxpose.xlu0.b32.cont [5/16] (narrow) %v1878_v28, 16  ;;  %v1936_v14 = vpack.i.bf16 %v299_v12, %v267_v11  ;;  %v1938_v20 = vpack.i.bf16 %v300_v18, %v268_v17  ;;  %v1940_v26 = vpack.i.bf16 %v301_v24, %v269_v23  ;;  %v286_v27 = vld [vmem:[%s2223_s11 + $0xf8] sm:$0xff]  ;;  %v335_v34 = vld [vmem:[%s2223_s11 + $0x280] sm:$0xff]  ;;  %v336_v40 = vld [vmem:[%s2223_s11 + $0x288] sm:$0xff] }
  0x2f   : > { %v318_v28 = vld [vmem:[%s2223_s11 + $0x1f8] sm:$0xff]  ;;  %v351_v37 = vld [vmem:[%s2223_s11 + $0x300] sm:$0xff]  ;;  %v352_v43 = vld [vmem:[%s2223_s11 + $0x308] sm:$0xff] }
  0x30   : > { %1921 = vxpose.xlu1.b32.cont [5/16] (narrow) %v1920_v29, 16  ;;  %v270_v29 = vld [vmem:[%s2223_s11 + $0x78] sm:$0xff]  ;;  %v1900_v31 = vpack.i.bf16 %v318_v28, %v286_v27  ;;  %v337_v46 = vld [vmem:[%s2223_s11 + $0x290] sm:$0xff]  ;;  %v339_v58 = vld [vmem:[%s2223_s11 + $0x2a0] sm:$0xff] }
  0x31   : > { %v302_v30 = vld [vmem:[%s2223_s11 + $0x178] sm:$0xff]  ;;  %v353_v49 = vld [vmem:[%s2223_s11 + $0x310] sm:$0xff]  ;;  %v355_v61 = vld [vmem:[%s2223_s11 + $0x320] sm:$0xff] }
  0x32   : > { %1881 = vxpose.xlu0.b32.cont [6/16] (narrow) %v1880_v35, 16  ;;  %v1942_v33 = vpack.i.bf16 %v302_v30, %v270_v29  ;;  %v367_v35 = vld [vmem:[%s2223_s11 + $0x380] sm:$0xff]  ;;  %v338_v52 = vld [vmem:[%s2223_s11 + $0x298] sm:$0xff]  ;;  %v340_v0 = vld [vmem:[%s2223_s11 + $0x2a8] sm:$0xff] }
  0x33   : > { %v1954_v38 = vpack.i.bf16 %v367_v35, %v335_v34  ;;  %v354_v55 = vld [vmem:[%s2223_s11 + $0x318] sm:$0xff]  ;;  %v356_v3 = vld [vmem:[%s2223_s11 + $0x328] sm:$0xff]  ;;  %v341_v6 = vld [vmem:[%s2223_s11 + $0x2b0] sm:$0xff] }
  0x34   : > { %1923 = vxpose.xlu1.b32.cont [6/16] (narrow) %v1922_v36, 16  ;;  %v319_v36 = vld [vmem:[%s2223_s11 + $0x200] sm:$0xff]  ;;  %v357_v9 = vld [vmem:[%s2223_s11 + $0x330] sm:$0xff]  ;;  %v342_v12 = vld [vmem:[%s2223_s11 + $0x2b8] sm:$0xff] }
  0x35   : > { %v1996_v39 = vpack.i.bf16 %v351_v37, %v319_v36  ;;  %v358_v15 = vld [vmem:[%s2223_s11 + $0x338] sm:$0xff]  ;;  %v343_v18 = vld [vmem:[%s2223_s11 + $0x2c0] sm:$0xff]  ;;  %v344_v24 = vld [vmem:[%s2223_s11 + $0x2c8] sm:$0xff] }
  0x36   : > { %1883 = vxpose.xlu0.b32.cont [7/16] (narrow) %v1882_v41, 16  ;;  %v368_v41 = vld [vmem:[%s2223_s11 + $0x388] sm:$0xff]  ;;  %v359_v21 = vld [vmem:[%s2223_s11 + $0x340] sm:$0xff]  ;;  %v345_v30 = vld [vmem:[%s2223_s11 + $0x2d0] sm:$0xff] }
  0x37   : > { %v1956_v44 = vpack.i.bf16 %v368_v41, %v336_v40  ;;  %v360_v27 = vld [vmem:[%s2223_s11 + $0x348] sm:$0xff]  ;;  %v361_v34 = vld [vmem:[%s2223_s11 + $0x350] sm:$0xff]  ;;  %v346_v37 = vld [vmem:[%s2223_s11 + $0x2d8] sm:$0xff] }
  0x38   : > { %1925 = vxpose.xlu1.b32.cont [7/16] (narrow) %v1924_v42, 16  ;;  %v320_v42 = vld [vmem:[%s2223_s11 + $0x208] sm:$0xff]  ;;  %v362_v40 = vld [vmem:[%s2223_s11 + $0x358] sm:$0xff] }
  0x39   : > { %v1998_v45 = vpack.i.bf16 %v352_v43, %v320_v42  ;;  %v347_v43 = vld [vmem:[%s2223_s11 + $0x2e0] sm:$0xff] }
  0x3a   : > { %1885 = vxpose.xlu0.b32.cont [8/16] (narrow) %v1884_v47, 16  ;;  %v369_v47 = vld [vmem:[%s2223_s11 + $0x390] sm:$0xff] }
  0x3b   : > { %v1958_v50 = vpack.i.bf16 %v369_v47, %v337_v46  ;;  %v363_v46 = vld [vmem:[%s2223_s11 + $0x360] sm:$0xff] }
  0x3c   : > { %1927 = vxpose.xlu1.b32.cont [8/16] (narrow) %v1926_v48, 16  ;;  %v321_v48 = vld [vmem:[%s2223_s11 + $0x210] sm:$0xff] }
  0x3d   : > { %v2000_v51 = vpack.i.bf16 %v353_v49, %v321_v48  ;;  %v348_v49 = vld [vmem:[%s2223_s11 + $0x2e8] sm:$0xff] }
  0x3e   : > { %1887 = vxpose.xlu0.b32.cont [9/16] (narrow) %v1886_v53, 16  ;;  %v370_v53 = vld [vmem:[%s2223_s11 + $0x398] sm:$0xff] }
  0x3f   : > { %v1960_v56 = vpack.i.bf16 %v370_v53, %v338_v52  ;;  %v364_v52 = vld [vmem:[%s2223_s11 + $0x368] sm:$0xff] }
  0x40   : > { %1929 = vxpose.xlu1.b32.cont [9/16] (narrow) %v1928_v54, 16  ;;  %v322_v54 = vld [vmem:[%s2223_s11 + $0x218] sm:$0xff] }
  0x41   : > { %v2002_v57 = vpack.i.bf16 %v354_v55, %v322_v54  ;;  %v349_v55 = vld [vmem:[%s2223_s11 + $0x2f0] sm:$0xff] }
  0x42   : > { %1889 = vxpose.xlu0.b32.cont [10/16] (narrow) %v1888_v59, 16  ;;  %v371_v59 = vld [vmem:[%s2223_s11 + $0x3a0] sm:$0xff] }
  0x43   : > { %v1962_v62 = vpack.i.bf16 %v371_v59, %v339_v58  ;;  %v365_v58 = vld [vmem:[%s2223_s11 + $0x370] sm:$0xff] }
  0x44   : > { %1931 = vxpose.xlu1.b32.cont [10/16] (narrow) %v1930_v60, 16  ;;  %v323_v60 = vld [vmem:[%s2223_s11 + $0x220] sm:$0xff] }
  0x45   : > { %v2004_v63 = vpack.i.bf16 %v355_v61, %v323_v60  ;;  %v350_v61 = vld [vmem:[%s2223_s11 + $0x2f8] sm:$0xff] }
  0x46   : > { %1891 = vxpose.xlu0.b32.cont [11/16] (narrow) %v1890_v1, 16  ;;  %v372_v1 = vld [vmem:[%s2223_s11 + $0x3a8] sm:$0xff] }
  0x47   : > { %v1964_v4 = vpack.i.bf16 %v372_v1, %v340_v0  ;;  %v366_v0 = vld [vmem:[%s2223_s11 + $0x378] sm:$0xff] }
  0x48   : > { %1933 = vxpose.xlu1.b32.cont [11/16] (narrow) %v1932_v2, 16  ;;  %v324_v2 = vld [vmem:[%s2223_s11 + $0x228] sm:$0xff] }
  0x49   : > { %v2006_v5 = vpack.i.bf16 %v356_v3, %v324_v2 }
  0x4a   : > { %1893 = vxpose.xlu0.b32.cont [12/16] (narrow) %v1892_v7, 16  ;;  %v373_v7 = vld [vmem:[%s2223_s11 + $0x3b0] sm:$0xff] }
  0x4b   : > { %v1966_v10 = vpack.i.bf16 %v373_v7, %v341_v6 }
  0x4c   : > { %1935 = vxpose.xlu1.b32.cont [12/16] (narrow) %v1934_v8, 16  ;;  %v325_v8 = vld [vmem:[%s2223_s11 + $0x230] sm:$0xff] }
  0x4d   : > { %v2008_v11 = vpack.i.bf16 %v357_v9, %v325_v8 }
  0x4e   : > { %1895 = vxpose.xlu0.b32.cont [13/16] (narrow) %v1894_v13, 16  ;;  %v374_v13 = vld [vmem:[%s2223_s11 + $0x3b8] sm:$0xff] }
  0x4f   : > { %v1968_v16 = vpack.i.bf16 %v374_v13, %v342_v12 }
  0x50   : > { %1937 = vxpose.xlu1.b32.cont [13/16] (narrow) %v1936_v14, 16  ;;  %v326_v14 = vld [vmem:[%s2223_s11 + $0x238] sm:$0xff] }
  0x51   : > { %v2010_v17 = vpack.i.bf16 %v358_v15, %v326_v14 }
  0x52   : > { %1897 = vxpose.xlu0.b32.cont [14/16] (narrow) %v1896_v19, 16  ;;  %v375_v19 = vld [vmem:[%s2223_s11 + $0x3c0] sm:$0xff] }
  0x53   : > { %v1970_v22 = vpack.i.bf16 %v375_v19, %v343_v18 }
  0x54   : > { %1939 = vxpose.xlu1.b32.cont [14/16] (narrow) %v1938_v20, 16  ;;  %v327_v20 = vld [vmem:[%s2223_s11 + $0x240] sm:$0xff] }
  0x55   : > { %v2012_v23 = vpack.i.bf16 %v359_v21, %v327_v20 }
  0x56   : > { %1899 = vxpose.xlu0.b32.cont [15/16] (narrow) %v1898_v25, 16  ;;  %v376_v25 = vld [vmem:[%s2223_s11 + $0x3c8] sm:$0xff] }
  0x57   : > { %v1972_v28 = vpack.i.bf16 %v376_v25, %v344_v24 }
  0x58   : > { %1941 = vxpose.xlu1.b32.cont [15/16] (narrow) %v1940_v26, 16  ;;  %v328_v26 = vld [vmem:[%s2223_s11 + $0x248] sm:$0xff] }
  0x59   : > { %v2014_v29 = vpack.i.bf16 %v360_v27, %v328_v26  ;;  %v2364_v26 = vld [vmem:[%s2836_s1] sm:$0xff]   ;;  %v2375_v27 = vld [vmem:[%s2836_s1 + $0x8] sm:$0xff]  }
  0x5a   : > { %1901 = vxpose.xlu0.b32.end [16/16] (narrow) %v1900_v31, 16  ;;  %v377_v31 = vld [vmem:[%s2223_s11 + $0x3d0] sm:$0xff] }
  0x5b   : > { %v1974_v35 = vpack.i.bf16 %v377_v31, %v345_v30  ;;  %v657_v30 = vld [vmem:[%s2837_s2 + $0x10] sm:$0xff]  ;;  %v658_v31 = vld [vmem:[%s2837_s2 + $0x18] sm:$0xff] }
  0x5c   : > { %1943 = vxpose.xlu1.b32.end [16/16] (narrow) %v1942_v33, 16  ;;  %v329_v33 = vld [vmem:[%s2223_s11 + $0x250] sm:$0xff] }
  0x5d   : > { %v2016_v36 = vpack.i.bf16 %v361_v34, %v329_v33  ;;  %v2407_v33 = vld [vmem:[%s2836_s1 + $0x18] sm:$0xff]   ;;  %v655_v34 = vld [vmem:[%s2837_s2] sm:$0xff] }
  0x5e   : > { %1955 = vxpose.xlu0.b32.start [1/16] (narrow) %v1954_v38, 16  ;;  %v378_v38 = vld [vmem:[%s2223_s11 + $0x3d8] sm:$0xff] }
  0x5f   : > { %v1976_v41 = vpack.i.bf16 %v378_v38, %v346_v37  ;;  %v661_v37 = vld [vmem:[%s2837_s2 + $0x30] sm:$0xff]  ;;  %v662_v38 = vld [vmem:[%s2837_s2 + $0x38] sm:$0xff] }
  0x60   : > { %1997 = vxpose.xlu1.b32.start [1/16] (narrow) %v1996_v39, 16  ;;  %v330_v39 = vld [vmem:[%s2223_s11 + $0x258] sm:$0xff] }
  0x61   : > { %v2018_v42 = vpack.i.bf16 %v362_v40, %v330_v39  ;;  %v1160_v39 = vld [vmem:[%s2839_s4] sm:$0xff]  ;;  %v1161_v40 = vld [vmem:[%s2839_s4 + $0x8] sm:$0xff] }
  0x62   : > { %1957 = vxpose.xlu0.b32.cont [2/16] (narrow) %v1956_v44, 16  ;;  %v379_v44 = vld [vmem:[%s2223_s11 + $0x3e0] sm:$0xff] }
  0x63   : > { %v1978_v47 = vpack.i.bf16 %v379_v44, %v347_v43  ;;  %v1164_v43 = vld [vmem:[%s2839_s4 + $0x20] sm:$0xff]  ;;  %v1165_v44 = vld [vmem:[%s2839_s4 + $0x28] sm:$0xff] }
  0x64   : > { %1999 = vxpose.xlu1.b32.cont [2/16] (narrow) %v1998_v45, 16  ;;  %v331_v45 = vld [vmem:[%s2223_s11 + $0x260] sm:$0xff] }
  0x65   : > { %v2020_v48 = vpack.i.bf16 %v363_v46, %v331_v45  ;;  %v1166_v45 = vld [vmem:[%s2839_s4 + $0x30] sm:$0xff]  ;;  %v1167_v46 = vld [vmem:[%s2839_s4 + $0x38] sm:$0xff] }
  0x66   : > { %1959 = vxpose.xlu0.b32.cont [3/16] (narrow) %v1958_v50, 16  ;;  %v380_v50 = vld [vmem:[%s2223_s11 + $0x3e8] sm:$0xff] }
  0x67   : > { %v1980_v53 = vpack.i.bf16 %v380_v50, %v348_v49 }
  0x68   : > { %2001 = vxpose.xlu1.b32.cont [3/16] (narrow) %v2000_v51, 16  ;;  %v332_v51 = vld [vmem:[%s2223_s11 + $0x268] sm:$0xff] }
  0x69   : > { %v2022_v54 = vpack.i.bf16 %v364_v52, %v332_v51 }
  0x6a   : > { %1961 = vxpose.xlu0.b32.cont [4/16] (narrow) %v1960_v56, 16  ;;  %v381_v56 = vld [vmem:[%s2223_s11 + $0x3f0] sm:$0xff] }
  0x6b   : > { %v1982_v59 = vpack.i.bf16 %v381_v56, %v349_v55 }
  0x6c   : > { %2003 = vxpose.xlu1.b32.cont [4/16] (narrow) %v2002_v57, 16  ;;  %v333_v57 = vld [vmem:[%s2223_s11 + $0x270] sm:$0xff] }
  0x6d   : > { %v2024_v60 = vpack.i.bf16 %v365_v58, %v333_v57 }
  0x6e   : > { %1963 = vxpose.xlu0.b32.cont [5/16] (narrow) %v1962_v62, 16  ;;  %v382_v62 = vld [vmem:[%s2223_s11 + $0x3f8] sm:$0xff] }
  0x6f   : > { %v1984_v1 = vpack.i.bf16 %v382_v62, %v350_v61 }
  0x70   : > { %2005 = vxpose.xlu1.b32.cont [5/16] (narrow) %v2004_v63, 16  ;;  %v334_v63 = vld [vmem:[%s2223_s11 + $0x278] sm:$0xff]  ;;  %s2054_s11 = scalar_lea.vmem %s2053_s10, 16384 }
  0x71   : > { %v2026_v2 = vpack.i.bf16 %v366_v0, %v334_v63  ;;  %p2056_p2 = scmp.lt.s32.totalorder %s2054_s11, %s2048_s8 }
  0x72   : > { %1965 = vxpose.xlu0.b32.cont [6/16] (narrow) %v1964_v4, 16 }
  0x73   : > { %p2057_p3 = por %p2056_p2, %p2055_p1 }
  0x74   : > { %2007 = vxpose.xlu1.b32.cont [6/16] (narrow) %v2006_v5, 16  ;;  %v2129_v5 = vmov 65535  }
  0x75   : > { %v738_v6 = vsel %vm736_vm0, 4294967295, %v2129_v5  ;;  %p2058_p5 = pnand %p2057_p3, %p2051_p0 }
  0x76   : > { %1967 = vxpose.xlu0.b32.cont [7/16] (narrow) %v1966_v10, 16  ;;  %v2355_v10 = vsel %vm737_vm1, %v738_v6, 0 }
  0x78   : > { %2009 = vxpose.xlu1.b32.cont [7/16] (narrow) %v2008_v11, 16 }
  0x7a   : > { %1969 = vxpose.xlu0.b32.cont [8/16] (narrow) %v1968_v16, 16 }
  0x7c   : > { %2011 = vxpose.xlu1.b32.cont [8/16] (narrow) %v2010_v17, 16 }
  0x7e   : > { %1971 = vxpose.xlu0.b32.cont [9/16] (narrow) %v1970_v22, 16 }
  0x80   : > { %2013 = vxpose.xlu1.b32.cont [9/16] (narrow) %v2012_v23, 16 }
  0x82   : > { %1973 = vxpose.xlu0.b32.cont [10/16] (narrow) %v1972_v28, 16  ;;  %v656_v28 = vld [vmem:[%s2837_s2 + $0x8] sm:$0xff] }
  0x84   : > { %2015 = vxpose.xlu1.b32.cont [10/16] (narrow) %v2014_v29, 16  ;;  %v2389_v29 = vld [vmem:[%s2836_s1 + $0x10] sm:$0xff]  }
  0x86   : > { %1975 = vxpose.xlu0.b32.cont [11/16] (narrow) %v1974_v35, 16  ;;  %v659_v35 = vld [vmem:[%s2837_s2 + $0x20] sm:$0xff] }
  0x88   : > { %2017 = vxpose.xlu1.b32.cont [11/16] (narrow) %v2016_v36, 16  ;;  %v660_v36 = vld [vmem:[%s2837_s2 + $0x28] sm:$0xff] }
  0x8a   : > { %1977 = vxpose.xlu0.b32.cont [12/16] (narrow) %v1976_v41, 16  ;;  %v1162_v41 = vld [vmem:[%s2839_s4 + $0x10] sm:$0xff] }
  0x8c   : > { %2019 = vxpose.xlu1.b32.cont [12/16] (narrow) %v2018_v42, 16  ;;  %v1163_v42 = vld [vmem:[%s2839_s4 + $0x18] sm:$0xff] }
  0x8e   : > { %1979 = vxpose.xlu0.b32.cont [13/16] (narrow) %v1978_v47, 16 }
  0x90   : > { %2021 = vxpose.xlu1.b32.cont [13/16] (narrow) %v2020_v48, 16 }
  0x92   : > { %1981 = vxpose.xlu0.b32.cont [14/16] (narrow) %v1980_v53, 16 }
  0x94   : > { %2023 = vxpose.xlu1.b32.cont [14/16] (narrow) %v2022_v54, 16 }
  0x96   : > { %1983 = vxpose.xlu0.b32.cont [15/16] (narrow) %v1982_v59, 16 }
  0x98   : > { %2025 = vxpose.xlu1.b32.cont [15/16] (narrow) %v2024_v60, 16 }
  0x9a   : > { %1985 = vxpose.xlu0.b32.end [16/16] (narrow) %v1984_v1, 16 }
  0x9c   : > { %2027 = vxpose.xlu1.b32.end [16/16] (narrow) %v2026_v2, 16 }
  0x9e   : > { %v1902_v3 = vpop.trf.xlu0 }
  0x9f   : > { %v1903_v7 = vunpack.i.l.bf16 %v1902_v3  ;;  %v1906_v8 = vunpack.i.h.bf16 %v1902_v3 }
  0xa0   : > { %v1944_v4 = vpop.trf.xlu1 }
  0xa1   : > { %v1945_v11 = vunpack.i.l.bf16 %v1944_v4  ;;  %v1948_v12 = vunpack.i.h.bf16 %v1944_v4 }
  0xa2   : > { %v1907_v9 = vpop.trf.xlu0 }
  0xa3   : > { %v1908_v14 = vunpack.i.l.bf16 %v1907_v9  ;;  %v1911_v15 = vunpack.i.h.bf16 %v1907_v9 }
  0xa4   : > { %v1949_v13 = vpop.trf.xlu1 }
  0xa5   : > { %v1950_v16 = vunpack.i.l.bf16 %v1949_v13  ;;  %v1953_v17 = vunpack.i.h.bf16 %v1949_v13  ;;  %v648_v18 = vpack.c.bf16 %v1908_v14, %v1903_v7  ;;  %v650_v19 = vpack.c.bf16 %v1911_v15, %v1906_v8 }
  0xa7   : > { %v647_v20 = vpack.c.bf16 %v1950_v16, %v1945_v11  ;;  %v649_v21 = vpack.c.bf16 %v1953_v17, %v1948_v12  ;;  %v744_v22 = vand.u32 %v2355_v10, %v648_v18  ;;  %v750_v23 = vand.u32 %v2355_v10, %v650_v19 }
  0xa9   : > { %v741_v24 = vand.u32 %v2355_v10, %v647_v20  ;;  %v747_v25 = vand.u32 %v2355_v10, %v649_v21  ;;  %764 = vmatprep.subr.bf16.mxu0 %v744_v22  ;;  %837 = vmatprep.subr.bf16.mxu1 %v750_v23 }
  0xab   : > { %765 = vmatpush1.bf16.msra.mxu0 %v741_v24  ;;  %838 = vmatpush1.bf16.msra.mxu1 %v747_v25 }
  0xae   : > { %1768 = vmatmul.mubr.msk.bf16.vlgmr.msra.gmra.mrb[0].mxu0 %vm723_vm2, %v2364_v26  ;;  %1772 = vmatmul.mubr.msk.bf16.vlgmr.msra.gmra.mrb[0].mxu1 %vm723_vm2, %v2364_v26 }
  0xaf   : > { %806 = vmatprep.mubr.bf16.mxu0 %v2128_v32  ;;  %879 = vmatprep.mubr.bf16.mxu1 %v2128_v32 }
  0xb6   : > { %1769 = vmatmul.mubr.msk.bf16.gmra.mrb[4].mxu0 %vm723_vm2, %v2375_v27  ;;  %1773 = vmatmul.mubr.msk.bf16.gmra.mrb[4].mxu1 %vm723_vm2, %v2375_v27 }
  0xb7   : > { %816 = vmatprep.mubr.bf16.mxu0 %v2128_v32  ;;  %889 = vmatprep.mubr.bf16.mxu1 %v2128_v32 }
  0xba   : > { %2039 = vset.pattern.permute.xlu1 %v2128_v32 }
  0xbb   : > { %670 = vperm.xlu1 %2039, %v656_v28  }
  0xbe   : > { %1770 = vmatmul.mubr.msk.bf16.gmra.mrb[8].mxu0 %vm723_vm2, %v2389_v29  ;;  %1774 = vmatmul.mubr.msk.bf16.gmra.mrb[8].mxu1 %vm723_vm2, %v2389_v29 }
  0xbf   : > { %826 = vmatprep.mubr.bf16.mxu0 %v2128_v32  ;;  %899 = vmatprep.mubr.bf16.mxu1 %v2128_v32 }
  0xc0   : > { %675 = vperm.xlu1 %2039, %v657_v30  }
  0xc3   : > { %2038 = vset.pattern.permute.xlu0 %v2128_v32 }
  0xc4   : > { %680 = vperm.xlu1 %2039, %v658_v31   ;;  %665 = vperm.xlu0 %2038, %v655_v34  }
  0xc6   : > { %1771 = vmatmul.mubr.msk.bf16.gmra.mrb[12].mxu0 %vm723_vm2, %v2407_v33  ;;  %1775 = vmatmul.mubr.msk.bf16.gmra.mrb[12].mxu1 %vm723_vm2, %v2407_v33 }
  0xc7   : > { %942 = vmatprep.mubr.bf16.mxu0 %v2128_v32  ;;  %1015 = vmatprep.mubr.bf16.mxu1 %v2128_v32 }
  0xc8   : > { %685 = vperm.xlu1 %2039, %v659_v35   ;;  %690 = vperm.xlu0 %2038, %v660_v36  }
  0xcc   : > { %695 = vperm.xlu1 %2039, %v661_v37   ;;  %700 = vperm.xlu0 %2038, %v662_v38  }
  0xd0   : > { %1170 = vperm.xlu1 %2039, %v1160_v39   ;;  %1175 = vperm.xlu0 %2038, %v1161_v40  }
  0xd4   : > { %1180 = vperm.xlu1 %2039, %v1162_v41   ;;  %1185 = vperm.xlu0 %2038, %v1163_v42  }
  0xd8   : > { %1190 = vperm.xlu1 %2039, %v1164_v43   ;;  %1195 = vperm.xlu0 %2038, %v1165_v44  }
  0xdc   : > { %1200 = vperm.xlu1 %2039, %v1166_v45   ;;  %1205 = vperm.xlu0 %2038, %v1167_v46  }
  0xde   : > { %v1986_v47 = vpop.trf.xlu0 }
  0xdf   : > { %v1990_v49 = vunpack.i.h.bf16 %v1986_v47  ;;  %v1987_v50 = vunpack.i.l.bf16 %v1986_v47 }
  0xe0   : > { %v2028_v48 = vpop.trf.xlu1 }
  0xe1   : > { %v2032_v51 = vunpack.i.h.bf16 %v2028_v48  ;;  %v2029_v52 = vunpack.i.l.bf16 %v2028_v48 }
  0xe2   : > { %v1991_v53 = vpop.trf.xlu0 }
  0xe3   : > { %v1995_v54 = vunpack.i.h.bf16 %v1991_v53  ;;  %v1992_v55 = vunpack.i.l.bf16 %v1991_v53 }
  0xe4   : > { %v2033_v56 = vpop.trf.xlu1 }
  0xe5   : > { %v2037_v57 = vunpack.i.h.bf16 %v2033_v56  ;;  %v2034_v58 = vunpack.i.l.bf16 %v2033_v56  ;;  %v652_v59 = vpack.c.bf16 %v1992_v55, %v1987_v50  ;;  %v654_v60 = vpack.c.bf16 %v1995_v54, %v1990_v49 }
  0xe7   : > { %v651_v61 = vpack.c.bf16 %v2034_v58, %v2029_v52  ;;  %v653_v62 = vpack.c.bf16 %v2037_v57, %v2032_v51  ;;  %v756_v63 = vand.u32 %v2355_v10, %v652_v59  ;;  %v762_v0 = vand.u32 %v2355_v10, %v654_v60 }
  0xe9   : > { %v753_v1 = vand.u32 %v2355_v10, %v651_v61  ;;  %v759_v2 = vand.u32 %v2355_v10, %v653_v62  ;;  %910 = vmatprep.subr.bf16.mxu0 %v756_v63  ;;  %983 = vmatprep.subr.bf16.mxu1 %v762_v0 }
  0xeb   : > { %911 = vmatpush1.bf16.msra.mxu0 %v753_v1  ;;  %984 = vmatpush1.bf16.msra.mxu1 %v759_v2 }
  0xee   : > { %1776 = vmatmul.mubr.msk.bf16.vlgmr.msra.gmra.mrb[16].mxu0 %vm723_vm2, %v2364_v26  ;;  %1780 = vmatmul.mubr.msk.bf16.vlgmr.msra.gmra.mrb[16].mxu1 %vm723_vm2, %v2364_v26 }
  0xef   : > { %952 = vmatprep.mubr.bf16.mxu0 %v2128_v32  ;;  %1025 = vmatprep.mubr.bf16.mxu1 %v2128_v32 }
  0xf6   : > { %1777 = vmatmul.mubr.msk.bf16.gmra.mrb[20].mxu0 %vm723_vm2, %v2375_v27  ;;  %1781 = vmatmul.mubr.msk.bf16.gmra.mrb[20].mxu1 %vm723_vm2, %v2375_v27 }
  0xf7   : > { %962 = vmatprep.mubr.bf16.mxu0 %v2128_v32  ;;  %1035 = vmatprep.mubr.bf16.mxu1 %v2128_v32 }
  0xfe   : > { %1778 = vmatmul.mubr.msk.bf16.gmra.mrb[24].mxu0 %vm723_vm2, %v2389_v29  ;;  %1782 = vmatmul.mubr.msk.bf16.gmra.mrb[24].mxu1 %vm723_vm2, %v2389_v29 }
  0xff   : > { %972 = vmatprep.mubr.bf16.mxu0 %v2128_v32  ;;  %1045 = vmatprep.mubr.bf16.mxu1 %v2128_v32 }
 0x106   : > { %1779 = vmatmul.mubr.msk.bf16.gmra.mrb[28].mxu0 %vm723_vm2, %v2407_v33  ;;  %1783 = vmatmul.mubr.msk.bf16.gmra.mrb[28].mxu1 %vm723_vm2, %v2407_v33 }
 0x107   : > { %1273 = vmatprep.mubr.bf16.mxu0 %v2128_v32  ;;  %1346 = vmatprep.mubr.bf16.mxu1 %v2128_v32 }
 0x13a   : > { %v2483_v3 = vpop.permute.xlu1 %670 }
 0x13f   : > { %v2487_v5 = vpop.permute.xlu1 %675 }
 0x143   : > { %v2485_v4 = vpop.permute.xlu0 %665  ;;  %v2497_v30 = vpop.permute.xlu1 %680 }
 0x147   : > { %v2507_v60 = vpop.permute.xlu1 %685  ;;  %v2509_v61 = vpop.permute.xlu0 %690 }
 0x181   : > { %v798_v6 = vpop.f32.mrb[0].mxu0  ;;  %v871_v7 = vpop.f32.mrb[0].mxu1 }
 0x182   : > { %v800_v8 = vpop.f32.mrb[1].mxu0  ;;  %v873_v9 = vpop.f32.mrb[1].mxu1  ;;  %v799_v10 = vadd.f32 %v798_v6, %v2485_v4  ;;  %v872_v11 = vadd.f32 %v871_v7, %v2485_v4 }
 0x183   : > { %v802_v12 = vpop.f32.mrb[2].mxu0  ;;  %v875_v13 = vpop.f32.mrb[2].mxu1  ;;  %v801_v14 = vadd.f32 %v800_v8, %v2485_v4  ;;  %v874_v15 = vadd.f32 %v873_v9, %v2485_v4 }
 0x184   : > { %v803_v16 = vadd.f32 %v802_v12, %v2483_v3  ;;  %v876_v17 = vadd.f32 %v875_v13, %v2483_v3  ;;  %v804_v18 = vpop.f32.mrb[3].mxu0  ;;  %v877_v19 = vpop.f32.mrb[3].mxu1  ;;  %v1056_v20 = vmax.f32 %v799_v10, 0.0  ;;  %v1058_v21 = vmax.f32 %v872_v11, 0.0 }
 0x185   : > { %v805_v22 = vadd.f32 %v804_v18, %v2483_v3  ;;  %v1057_v23 = vmax.f32 %v801_v14, 0.0  ;;  %v878_v24 = vadd.f32 %v877_v19, %v2483_v3  ;;  %v1059_v25 = vmax.f32 %v874_v15, 0.0 }
 0x186   : > { %v1064_v26 = vmax.f32 %v803_v16, 0.0  ;;  %v1066_v27 = vmax.f32 %v876_v17, 0.0 }
 0x187   : > { %v1065_v28 = vmax.f32 %v805_v22, 0.0  ;;  %v1067_v29 = vmax.f32 %v878_v24, 0.0 }
 0x188   : > { %v1128_v31 = vpack.c.bf16 %v1064_v26, %v1056_v20  ;;  %v1130_v33 = vpack.c.bf16 %v1066_v27, %v1058_v21 }
 0x189   : > { %v1129_v34 = vpack.c.bf16 %v1065_v28, %v1057_v23  ;;  %v1131_v35 = vpack.c.bf16 %v1067_v29, %v1059_v25  ;;  %v808_v36 = vpop.f32.mrb[4].mxu0  ;;  %v881_v37 = vpop.f32.mrb[4].mxu1 }
 0x18a   : > { %v809_v38 = vadd.f32 %v808_v36, %v2487_v5  ;;  %v882_v39 = vadd.f32 %v881_v37, %v2487_v5  ;;  %v810_v40 = vpop.f32.mrb[5].mxu0  ;;  %v883_v41 = vpop.f32.mrb[5].mxu1 }
 0x18b   : > { %v811_v42 = vadd.f32 %v810_v40, %v2487_v5  ;;  %v884_v43 = vadd.f32 %v883_v41, %v2487_v5  ;;  %v812_v44 = vpop.f32.mrb[6].mxu0  ;;  %v885_v45 = vpop.f32.mrb[6].mxu1  ;;  %1241 = vmatprep.subr.bf16.mxu0 %v1129_v34  ;;  %1314 = vmatprep.subr.bf16.mxu1 %v1131_v35 }
 0x18c   : > { %v1072_v46 = vmax.f32 %v809_v38, 0.0  ;;  %v1074_v47 = vmax.f32 %v882_v39, 0.0  ;;  %v814_v48 = vpop.f32.mrb[7].mxu0  ;;  %v887_v49 = vpop.f32.mrb[7].mxu1  ;;  %1242 = vmatpush1.bf16.msra.mxu0 %v1128_v31  ;;  %1315 = vmatpush1.bf16.msra.mxu1 %v1130_v33  ;;  %v813_v50 = vadd.f32 %v812_v44, %v2497_v30  ;;  %v886_v51 = vadd.f32 %v885_v45, %v2497_v30 }
 0x18d   : > { %v1073_v52 = vmax.f32 %v811_v42, 0.0  ;;  %v1075_v53 = vmax.f32 %v884_v43, 0.0  ;;  %v815_v54 = vadd.f32 %v814_v48, %v2497_v30  ;;  %v888_v55 = vadd.f32 %v887_v49, %v2497_v30  ;;  %v2519_v29 = vpop.permute.xlu1 %695  ;;  %v2521_v31 = vpop.permute.xlu0 %700 }
 0x18e   : > { %v1080_v56 = vmax.f32 %v813_v50, 0.0  ;;  %v1082_v57 = vmax.f32 %v886_v51, 0.0 }
 0x18f   : > { %v1081_v58 = vmax.f32 %v815_v54, 0.0  ;;  %v1083_v59 = vmax.f32 %v888_v55, 0.0 }
 0x190   : > { %v1136_v62 = vpack.c.bf16 %v1080_v56, %v1072_v46  ;;  %v1138_v63 = vpack.c.bf16 %v1082_v57, %v1074_v47 }
 0x191   : > { %v1137_v0 = vpack.c.bf16 %v1081_v58, %v1073_v52  ;;  %v1139_v1 = vpack.c.bf16 %v1083_v59, %v1075_v53  ;;  %v818_v2 = vpop.f32.mrb[8].mxu0  ;;  %v891_v6 = vpop.f32.mrb[8].mxu1 }
 0x192   : > { %v820_v7 = vpop.f32.mrb[9].mxu0  ;;  %v893_v8 = vpop.f32.mrb[9].mxu1  ;;  %v819_v9 = vadd.f32 %v818_v2, %v2507_v60  ;;  %v892_v10 = vadd.f32 %v891_v6, %v2507_v60  ;;  %v2534_v6 = vld [vmem:[%s2838_s3] sm:$0xff]  }
 0x193   : > { %v822_v11 = vpop.f32.mrb[10].mxu0  ;;  %v895_v12 = vpop.f32.mrb[10].mxu1  ;;  %v821_v13 = vadd.f32 %v820_v7, %v2507_v60  ;;  %v894_v14 = vadd.f32 %v893_v8, %v2507_v60  ;;  %1243 = vmatprep.subr.bf16.mxu0 %v1137_v0  ;;  %1316 = vmatprep.subr.bf16.mxu1 %v1139_v1  ;;  %v2545_v7 = vld [vmem:[%s2838_s3 + $0x8] sm:$0xff]   ;;  %v2556_v8 = vld [vmem:[%s2838_s3 + $0x10] sm:$0xff]  }
 0x194   : > { %v824_v15 = vpop.f32.mrb[11].mxu0  ;;  %v897_v16 = vpop.f32.mrb[11].mxu1  ;;  %1244 = vmatpush1.bf16.msra.mxu0 %v1136_v62  ;;  %1317 = vmatpush1.bf16.msra.mxu1 %v1138_v63  ;;  %v823_v17 = vadd.f32 %v822_v11, %v2509_v61  ;;  %v1088_v18 = vmax.f32 %v819_v9, 0.0  ;;  %v896_v19 = vadd.f32 %v895_v12, %v2509_v61  ;;  %v1090_v20 = vmax.f32 %v892_v10, 0.0  ;;  %v2567_v9 = vld [vmem:[%s2838_s3 + $0x18] sm:$0xff]  }
 0x195   : > { %v825_v21 = vadd.f32 %v824_v15, %v2509_v61  ;;  %v1089_v22 = vmax.f32 %v821_v13, 0.0  ;;  %v898_v23 = vadd.f32 %v897_v16, %v2509_v61  ;;  %v1091_v24 = vmax.f32 %v894_v14, 0.0 }
 0x196   : > { %v1096_v25 = vmax.f32 %v823_v17, 0.0  ;;  %v1098_v26 = vmax.f32 %v896_v19, 0.0 }
 0x197   : > { %v1097_v27 = vmax.f32 %v825_v21, 0.0  ;;  %v1099_v28 = vmax.f32 %v898_v23, 0.0 }
 0x198   : > { %v1144_v33 = vpack.c.bf16 %v1096_v25, %v1088_v18  ;;  %v1146_v34 = vpack.c.bf16 %v1098_v26, %v1090_v20 }
 0x199   : > { %v1145_v35 = vpack.c.bf16 %v1097_v27, %v1089_v22  ;;  %v1147_v36 = vpack.c.bf16 %v1099_v28, %v1091_v24  ;;  %v828_v37 = vpop.f32.mrb[12].mxu0  ;;  %v901_v38 = vpop.f32.mrb[12].mxu1 }
 0x19a   : > { %v830_v39 = vpop.f32.mrb[13].mxu0  ;;  %v903_v40 = vpop.f32.mrb[13].mxu1  ;;  %v829_v41 = vadd.f32 %v828_v37, %v2519_v29  ;;  %v902_v42 = vadd.f32 %v901_v38, %v2519_v29 }
 0x19b   : > { %v832_v43 = vpop.f32.mrb[14].mxu0  ;;  %v905_v44 = vpop.f32.mrb[14].mxu1  ;;  %v831_v45 = vadd.f32 %v830_v39, %v2519_v29  ;;  %v904_v46 = vadd.f32 %v903_v40, %v2519_v29  ;;  %1245 = vmatprep.subr.bf16.mxu0 %v1145_v35  ;;  %1318 = vmatprep.subr.bf16.mxu1 %v1147_v36 }
 0x19c   : > { %v834_v47 = vpop.f32.mrb[15].mxu0  ;;  %v907_v48 = vpop.f32.mrb[15].mxu1  ;;  %1246 = vmatpush1.bf16.msra.mxu0 %v1144_v33  ;;  %1319 = vmatpush1.bf16.msra.mxu1 %v1146_v34  ;;  %v833_v49 = vadd.f32 %v832_v43, %v2521_v31  ;;  %v1104_v50 = vmax.f32 %v829_v41, 0.0  ;;  %v906_v51 = vadd.f32 %v905_v44, %v2521_v31  ;;  %v1106_v52 = vmax.f32 %v902_v42, 0.0 }
 0x19d   : > { %v835_v53 = vadd.f32 %v834_v47, %v2521_v31  ;;  %v1105_v54 = vmax.f32 %v831_v45, 0.0  ;;  %v908_v55 = vadd.f32 %v907_v48, %v2521_v31  ;;  %v1107_v56 = vmax.f32 %v904_v46, 0.0 }
 0x19e   : > { %v1112_v57 = vmax.f32 %v833_v49, 0.0  ;;  %v1114_v58 = vmax.f32 %v906_v51, 0.0 }
 0x19f   : > { %v1113_v59 = vmax.f32 %v835_v53, 0.0  ;;  %v1115_v62 = vmax.f32 %v908_v55, 0.0 }
 0x1a0   : > { %v1152_v63 = vpack.c.bf16 %v1112_v57, %v1104_v50  ;;  %v1154_v0 = vpack.c.bf16 %v1114_v58, %v1106_v52 }
 0x1a1   : > { %v1153_v1 = vpack.c.bf16 %v1113_v59, %v1105_v54  ;;  %v1155_v2 = vpack.c.bf16 %v1115_v62, %v1107_v56 }
 0x1a3   : > { %1247 = vmatprep.subr.bf16.mxu0 %v1153_v1  ;;  %1320 = vmatprep.subr.bf16.mxu1 %v1155_v2 }
 0x1a4   : > { %1248 = vmatpush1.bf16.msra.mxu0 %v1152_v63  ;;  %1321 = vmatpush1.bf16.msra.mxu1 %v1154_v0 }
 0x1a7   : > { %1788 = vmatmul.mubr.msk.bf16.vlgmr.msra.gmra.mrb[32].mxu0 %vm1228_vm3, %v2534_v6  ;;  %1792 = vmatmul.mubr.msk.bf16.vlgmr.msra.gmra.mrb[32].mxu1 %vm1228_vm3, %v2534_v6 }
 0x1a8   : > { %1283 = vmatprep.mubr.bf16.mxu0 %v2128_v32  ;;  %1356 = vmatprep.mubr.bf16.mxu1 %v2128_v32 }
 0x1af   : > { %1789 = vmatmul.mubr.msk.bf16.gmra.mrb[36].mxu0 %vm1228_vm3, %v2545_v7  ;;  %1793 = vmatmul.mubr.msk.bf16.gmra.mrb[36].mxu1 %vm1228_vm3, %v2545_v7 }
 0x1b0   : > { %1293 = vmatprep.mubr.bf16.mxu0 %v2128_v32  ;;  %1366 = vmatprep.mubr.bf16.mxu1 %v2128_v32 }
 0x1b7   : > { %1790 = vmatmul.mubr.msk.bf16.gmra.mrb[40].mxu0 %vm1228_vm3, %v2556_v8  ;;  %1794 = vmatmul.mubr.msk.bf16.gmra.mrb[40].mxu1 %vm1228_vm3, %v2556_v8 }
 0x1b8   : > { %1303 = vmatprep.mubr.bf16.mxu0 %v2128_v32  ;;  %1376 = vmatprep.mubr.bf16.mxu1 %v2128_v32 }
 0x1bf   : > { %1791 = vmatmul.mubr.msk.bf16.gmra.mrb[44].mxu0 %vm1228_vm3, %v2567_v9  ;;  %1795 = vmatmul.mubr.msk.bf16.gmra.mrb[44].mxu1 %vm1228_vm3, %v2567_v9 }
 0x1c0   : > { %1419 = vmatprep.mubr.bf16.mxu0 %v2128_v32  ;;  %1492 = vmatprep.mubr.bf16.mxu1 %v2128_v32 }
 0x1c1   : > { %v944_v10 = vpop.f32.mrb[16].mxu0  ;;  %v1017_v11 = vpop.f32.mrb[16].mxu1 }
 0x1c2   : > { %v945_v12 = vadd.f32 %v944_v10, %v2485_v4  ;;  %v1018_v13 = vadd.f32 %v1017_v11, %v2485_v4  ;;  %v946_v14 = vpop.f32.mrb[17].mxu0  ;;  %v1019_v15 = vpop.f32.mrb[17].mxu1 }
 0x1c3   : > { %v947_v16 = vadd.f32 %v946_v14, %v2485_v4  ;;  %v1020_v17 = vadd.f32 %v1019_v15, %v2485_v4  ;;  %v948_v18 = vpop.f32.mrb[18].mxu0  ;;  %v1021_v19 = vpop.f32.mrb[18].mxu1 }
 0x1c4   : > { %v949_v20 = vadd.f32 %v948_v18, %v2483_v3  ;;  %v1022_v21 = vadd.f32 %v1021_v19, %v2483_v3  ;;  %v950_v22 = vpop.f32.mrb[19].mxu0  ;;  %v1023_v23 = vpop.f32.mrb[19].mxu1  ;;  %v1060_v26 = vmax.f32 %v945_v12, 0.0  ;;  %v1062_v27 = vmax.f32 %v1018_v13, 0.0 }
 0x1c5   : > { %v951_v24 = vadd.f32 %v950_v22, %v2483_v3  ;;  %v1024_v25 = vadd.f32 %v1023_v23, %v2483_v3  ;;  %v1061_v34 = vmax.f32 %v947_v16, 0.0  ;;  %v1063_v35 = vmax.f32 %v1020_v17, 0.0 }
 0x1c6   : > { %v1068_v28 = vmax.f32 %v949_v20, 0.0  ;;  %v1070_v33 = vmax.f32 %v1022_v21, 0.0 }
 0x1c7   : > { %v1069_v36 = vmax.f32 %v951_v24, 0.0  ;;  %v1071_v4 = vmax.f32 %v1024_v25, 0.0 }
 0x1c8   : > { %v1132_v37 = vpack.c.bf16 %v1068_v28, %v1060_v26  ;;  %v1134_v38 = vpack.c.bf16 %v1070_v33, %v1062_v27 }
 0x1c9   : > { %v1133_v39 = vpack.c.bf16 %v1069_v36, %v1061_v34  ;;  %v1135_v40 = vpack.c.bf16 %v1071_v4, %v1063_v35  ;;  %v954_v41 = vpop.f32.mrb[20].mxu0  ;;  %v1027_v42 = vpop.f32.mrb[20].mxu1 }
 0x1ca   : > { %v955_v43 = vadd.f32 %v954_v41, %v2487_v5  ;;  %v1028_v44 = vadd.f32 %v1027_v42, %v2487_v5  ;;  %v956_v45 = vpop.f32.mrb[21].mxu0  ;;  %v1029_v3 = vpop.f32.mrb[21].mxu1 }
 0x1cb   : > { %v957_v46 = vadd.f32 %v956_v45, %v2487_v5  ;;  %v1030_v47 = vadd.f32 %v1029_v3, %v2487_v5  ;;  %v958_v48 = vpop.f32.mrb[22].mxu0  ;;  %v1031_v49 = vpop.f32.mrb[22].mxu1  ;;  %1387 = vmatprep.subr.bf16.mxu0 %v1133_v39  ;;  %1460 = vmatprep.subr.bf16.mxu1 %v1135_v40 }
 0x1cc   : > { %v959_v50 = vadd.f32 %v958_v48, %v2497_v30  ;;  %v1032_v51 = vadd.f32 %v1031_v49, %v2497_v30  ;;  %v960_v52 = vpop.f32.mrb[23].mxu0  ;;  %v1033_v53 = vpop.f32.mrb[23].mxu1  ;;  %1388 = vmatpush1.bf16.msra.mxu0 %v1132_v37  ;;  %1461 = vmatpush1.bf16.msra.mxu1 %v1134_v38  ;;  %v1076_v56 = vmax.f32 %v955_v43, 0.0  ;;  %v1078_v57 = vmax.f32 %v1028_v44, 0.0 }
 0x1cd   : > { %v961_v54 = vadd.f32 %v960_v52, %v2497_v30  ;;  %v1034_v55 = vadd.f32 %v1033_v53, %v2497_v30  ;;  %v1077_v59 = vmax.f32 %v957_v46, 0.0  ;;  %v1079_v62 = vmax.f32 %v1030_v47, 0.0 }
 0x1ce   : > { %v1084_v58 = vmax.f32 %v959_v50, 0.0  ;;  %v1086_v5 = vmax.f32 %v1032_v51, 0.0 }
 0x1cf   : > { %v1085_v63 = vmax.f32 %v961_v54, 0.0  ;;  %v1087_v0 = vmax.f32 %v1034_v55, 0.0 }
 0x1d0   : > { %v1140_v1 = vpack.c.bf16 %v1084_v58, %v1076_v56  ;;  %v1142_v2 = vpack.c.bf16 %v1086_v5, %v1078_v57 }
 0x1d1   : > { %v1141_v10 = vpack.c.bf16 %v1085_v63, %v1077_v59  ;;  %v1143_v11 = vpack.c.bf16 %v1087_v0, %v1079_v62  ;;  %v964_v12 = vpop.f32.mrb[24].mxu0  ;;  %v1037_v13 = vpop.f32.mrb[24].mxu1 }
 0x1d2   : > { %v965_v14 = vadd.f32 %v964_v12, %v2507_v60  ;;  %v1038_v15 = vadd.f32 %v1037_v13, %v2507_v60  ;;  %v966_v16 = vpop.f32.mrb[25].mxu0  ;;  %v1039_v30 = vpop.f32.mrb[25].mxu1 }
 0x1d3   : > { %v967_v17 = vadd.f32 %v966_v16, %v2507_v60  ;;  %v1040_v18 = vadd.f32 %v1039_v30, %v2507_v60  ;;  %v968_v19 = vpop.f32.mrb[26].mxu0  ;;  %v1041_v20 = vpop.f32.mrb[26].mxu1  ;;  %1389 = vmatprep.subr.bf16.mxu0 %v1141_v10  ;;  %1462 = vmatprep.subr.bf16.mxu1 %v1143_v11 }
 0x1d4   : > { %v969_v21 = vadd.f32 %v968_v19, %v2509_v61  ;;  %v1042_v22 = vadd.f32 %v1041_v20, %v2509_v61  ;;  %v970_v23 = vpop.f32.mrb[27].mxu0  ;;  %v1043_v24 = vpop.f32.mrb[27].mxu1  ;;  %1390 = vmatpush1.bf16.msra.mxu0 %v1140_v1  ;;  %1463 = vmatpush1.bf16.msra.mxu1 %v1142_v2  ;;  %v1092_v27 = vmax.f32 %v965_v14, 0.0  ;;  %v1094_v28 = vmax.f32 %v1038_v15, 0.0 }
 0x1d5   : > { %v971_v25 = vadd.f32 %v970_v23, %v2509_v61  ;;  %v1044_v26 = vadd.f32 %v1043_v24, %v2509_v61  ;;  %v1093_v34 = vmax.f32 %v967_v17, 0.0  ;;  %v1095_v35 = vmax.f32 %v1040_v18, 0.0 }
 0x1d6   : > { %v1100_v33 = vmax.f32 %v969_v21, 0.0  ;;  %v1102_v60 = vmax.f32 %v1042_v22, 0.0 }
 0x1d7   : > { %v1101_v36 = vmax.f32 %v971_v25, 0.0  ;;  %v1103_v4 = vmax.f32 %v1044_v26, 0.0 }
 0x1d8   : > { %v1148_v37 = vpack.c.bf16 %v1100_v33, %v1092_v27  ;;  %v1150_v38 = vpack.c.bf16 %v1102_v60, %v1094_v28 }
 0x1d9   : > { %v1149_v39 = vpack.c.bf16 %v1101_v36, %v1093_v34  ;;  %v1151_v40 = vpack.c.bf16 %v1103_v4, %v1095_v35  ;;  %v974_v41 = vpop.f32.mrb[28].mxu0  ;;  %v1047_v42 = vpop.f32.mrb[28].mxu1 }
 0x1da   : > { %v975_v43 = vadd.f32 %v974_v41, %v2519_v29  ;;  %v1048_v44 = vadd.f32 %v1047_v42, %v2519_v29  ;;  %v976_v45 = vpop.f32.mrb[29].mxu0  ;;  %v1049_v61 = vpop.f32.mrb[29].mxu1 }
 0x1db   : > { %v977_v3 = vadd.f32 %v976_v45, %v2519_v29  ;;  %v1050_v46 = vadd.f32 %v1049_v61, %v2519_v29  ;;  %v978_v47 = vpop.f32.mrb[30].mxu0  ;;  %v1051_v48 = vpop.f32.mrb[30].mxu1  ;;  %1391 = vmatprep.subr.bf16.mxu0 %v1149_v39  ;;  %1464 = vmatprep.subr.bf16.mxu1 %v1151_v40 }
 0x1dc   : > { %v979_v49 = vadd.f32 %v978_v47, %v2521_v31  ;;  %v1052_v50 = vadd.f32 %v1051_v48, %v2521_v31  ;;  %v980_v51 = vpop.f32.mrb[31].mxu0  ;;  %v1053_v52 = vpop.f32.mrb[31].mxu1  ;;  %1392 = vmatpush1.bf16.msra.mxu0 %v1148_v37  ;;  %1465 = vmatpush1.bf16.msra.mxu1 %v1150_v38  ;;  %v1108_v55 = vmax.f32 %v975_v43, 0.0  ;;  %v1110_v56 = vmax.f32 %v1048_v44, 0.0 }
 0x1dd   : > { %v981_v53 = vadd.f32 %v980_v51, %v2521_v31  ;;  %v1054_v54 = vadd.f32 %v1053_v52, %v2521_v31  ;;  %v1109_v58 = vmax.f32 %v977_v3, 0.0  ;;  %v1111_v5 = vmax.f32 %v1050_v46, 0.0  ;;  %v2630_v31 = vpop.permute.xlu0 %1175 }
 0x1de   : > { %v1116_v57 = vmax.f32 %v979_v49, 0.0  ;;  %v1118_v29 = vmax.f32 %v1052_v50, 0.0 }
 0x1df   : > { %v1117_v59 = vmax.f32 %v981_v53, 0.0  ;;  %v1119_v62 = vmax.f32 %v1054_v54, 0.0 }
 0x1e0   : > { %v1156_v63 = vpack.c.bf16 %v1116_v57, %v1108_v55  ;;  %v1158_v0 = vpack.c.bf16 %v1118_v29, %v1110_v56 }
 0x1e1   : > { %v1157_v1 = vpack.c.bf16 %v1117_v59, %v1109_v58  ;;  %v1159_v2 = vpack.c.bf16 %v1119_v62, %v1111_v5  ;;  %v2650_v33 = vpop.permute.xlu0 %1185 }
 0x1e3   : > { %1393 = vmatprep.subr.bf16.mxu0 %v1157_v1  ;;  %1466 = vmatprep.subr.bf16.mxu1 %v1159_v2 }
 0x1e4   : > { %1394 = vmatpush1.bf16.msra.mxu0 %v1156_v63  ;;  %1467 = vmatpush1.bf16.msra.mxu1 %v1158_v0 }
 0x1e5   : > { %v2670_v55 = vpop.permute.xlu0 %1195 }
 0x1e7   : > { %1796 = vmatmul.mubr.msk.bf16.vlgmr.msra.gmra.mrb[48].mxu0 %vm1228_vm3, %v2534_v6  ;;  %1800 = vmatmul.mubr.msk.bf16.vlgmr.msra.gmra.mrb[48].mxu1 %vm1228_vm3, %v2534_v6  ;;  %v2632_v6 = vpop.permute.xlu1 %1170 }
 0x1e8   : > { %1429 = vmatprep.mubr.bf16.mxu0 %v2128_v32  ;;  %1502 = vmatprep.mubr.bf16.mxu1 %v2128_v32 }
 0x1eb   : > { %v2652_v60 = vpop.permute.xlu1 %1180 }
 0x1ef   : > { %1797 = vmatmul.mubr.msk.bf16.gmra.mrb[52].mxu0 %vm1228_vm3, %v2545_v7  ;;  %1801 = vmatmul.mubr.msk.bf16.gmra.mrb[52].mxu1 %vm1228_vm3, %v2545_v7  ;;  %v2672_v56 = vpop.permute.xlu1 %1190 }
 0x1f0   : > { %1439 = vmatprep.mubr.bf16.mxu0 %v2128_v32  ;;  %1512 = vmatprep.mubr.bf16.mxu1 %v2128_v32 }
 0x1f7   : > { %1798 = vmatmul.mubr.msk.bf16.gmra.mrb[56].mxu0 %vm1228_vm3, %v2556_v8  ;;  %1802 = vmatmul.mubr.msk.bf16.gmra.mrb[56].mxu1 %vm1228_vm3, %v2556_v8 }
 0x1f8   : > { %1449 = vmatprep.mubr.bf16.mxu0 %v2128_v32  ;;  %1522 = vmatprep.mubr.bf16.mxu1 %v2128_v32 }
 0x1ff   : > { %1799 = vmatmul.mubr.msk.bf16.gmra.mrb[60].mxu0 %vm1228_vm3, %v2567_v9  ;;  %1803 = vmatmul.mubr.msk.bf16.gmra.mrb[60].mxu1 %vm1228_vm3, %v2567_v9 }
 0x27a   : > { %v1275_v7 = vpop.f32.mrb[32].mxu0  ;;  %v1348_v10 = vpop.f32.mrb[32].mxu1 }
 0x27b   : > { %v1276_v8 = vadd.f32 %v1275_v7, %v2632_v6  ;;  %v1349_v11 = vadd.f32 %v1348_v10, %v2632_v6  ;;  %v1277_v32 = vpop.f32.mrb[33].mxu0  ;;  %v1350_v12 = vpop.f32.mrb[33].mxu1 }
 0x27c   : > { %v1278_v13 = vadd.f32 %v1277_v32, %v2632_v6  ;;  %v1351_v14 = vadd.f32 %v1350_v12, %v2632_v6  ;;  %v1279_v9 = vpop.f32.mrb[34].mxu0  ;;  %v1352_v15 = vpop.f32.mrb[34].mxu1 }
 0x27d   : > { %v1533_v16 = vmax.f32 %v1276_v8, 0.0  ;;  %v1535_v30 = vmax.f32 %v1349_v11, 0.0  ;;  %v1280_v17 = vadd.f32 %v1279_v9, %v2630_v31  ;;  %v1353_v18 = vadd.f32 %v1352_v15, %v2630_v31  ;;  %v1281_v19 = vpop.f32.mrb[35].mxu0  ;;  %v1354_v20 = vpop.f32.mrb[35].mxu1 }
 0x27e   : > { %v1534_v21 = vmax.f32 %v1278_v13, 0.0  ;;  %v1536_v22 = vmax.f32 %v1351_v14, 0.0  ;;  %v1282_v23 = vadd.f32 %v1281_v19, %v2630_v31  ;;  %v1355_v24 = vadd.f32 %v1354_v20, %v2630_v31  ;;  %v2690_v19 = vpop.permute.xlu0 %1205  ;;  %v2692_v20 = vpop.permute.xlu1 %1200 }
 0x27f   : > { %1597 = vst [vmem:[%s2644_s17] sm:$0xff] %v1533_v16  ;;  %1599 = vst [vmem:[%s2644_s17 + $0x10] sm:$0xff] %v1535_v30  ;;  %v1541_v25 = vmax.f32 %v1280_v17, 0.0  ;;  %v1543_v26 = vmax.f32 %v1353_v18, 0.0 }
 0x280   : > { %1598 = vst [vmem:[%s2644_s17 + $0x8] sm:$0xff] %v1534_v21  ;;  %1600 = vst [vmem:[%s2644_s17 + $0x18] sm:$0xff] %v1536_v22  ;;  %v1542_v27 = vmax.f32 %v1282_v23, 0.0  ;;  %v1544_v28 = vmax.f32 %v1355_v24, 0.0 }
 0x281   : > { %1605 = vst [vmem:[%s2644_s17 + $0x40] sm:$0xff] %v1541_v25  ;;  %1607 = vst [vmem:[%s2644_s17 + $0x50] sm:$0xff] %v1543_v26 }
 0x282   : > { %1606 = vst [vmem:[%s2644_s17 + $0x48] sm:$0xff] %v1542_v27  ;;  %1608 = vst [vmem:[%s2644_s17 + $0x58] sm:$0xff] %v1544_v28  ;;  %v1285_v34 = vpop.f32.mrb[36].mxu0  ;;  %v1358_v35 = vpop.f32.mrb[36].mxu1 }
 0x283   : > { %v1286_v36 = vadd.f32 %v1285_v34, %v2652_v60  ;;  %v1359_v4 = vadd.f32 %v1358_v35, %v2652_v60  ;;  %v1287_v37 = vpop.f32.mrb[37].mxu0  ;;  %v1360_v38 = vpop.f32.mrb[37].mxu1 }
 0x284   : > { %v1288_v39 = vadd.f32 %v1287_v37, %v2652_v60  ;;  %v1361_v40 = vadd.f32 %v1360_v38, %v2652_v60  ;;  %v1289_v41 = vpop.f32.mrb[38].mxu0  ;;  %v1362_v42 = vpop.f32.mrb[38].mxu1 }
 0x285   : > { %v1549_v43 = vmax.f32 %v1286_v36, 0.0  ;;  %v1551_v44 = vmax.f32 %v1359_v4, 0.0  ;;  %v1290_v45 = vadd.f32 %v1289_v41, %v2650_v33  ;;  %v1363_v61 = vadd.f32 %v1362_v42, %v2650_v33  ;;  %v1291_v3 = vpop.f32.mrb[39].mxu0  ;;  %v1364_v46 = vpop.f32.mrb[39].mxu1 }
 0x286   : > { %v1550_v47 = vmax.f32 %v1288_v39, 0.0  ;;  %v1552_v48 = vmax.f32 %v1361_v40, 0.0  ;;  %v1292_v49 = vadd.f32 %v1291_v3, %v2650_v33  ;;  %v1365_v50 = vadd.f32 %v1364_v46, %v2650_v33 }
 0x287   : > { %1613 = vst [vmem:[%s2644_s17 + $0x80] sm:$0xff] %v1549_v43  ;;  %1615 = vst [vmem:[%s2644_s17 + $0x90] sm:$0xff] %v1551_v44  ;;  %v1557_v51 = vmax.f32 %v1290_v45, 0.0  ;;  %v1559_v52 = vmax.f32 %v1363_v61, 0.0 }
 0x288   : > { %1614 = vst [vmem:[%s2644_s17 + $0x88] sm:$0xff] %v1550_v47  ;;  %1616 = vst [vmem:[%s2644_s17 + $0x98] sm:$0xff] %v1552_v48  ;;  %v1558_v53 = vmax.f32 %v1292_v49, 0.0  ;;  %v1560_v54 = vmax.f32 %v1365_v50, 0.0 }
 0x289   : > { %1621 = vst [vmem:[%s2644_s17 + $0xc0] sm:$0xff] %v1557_v51  ;;  %1623 = vst [vmem:[%s2644_s17 + $0xd0] sm:$0xff] %v1559_v52 }
 0x28a   : > { %1622 = vst [vmem:[%s2644_s17 + $0xc8] sm:$0xff] %v1558_v53  ;;  %1624 = vst [vmem:[%s2644_s17 + $0xd8] sm:$0xff] %v1560_v54  ;;  %v1295_v57 = vpop.f32.mrb[40].mxu0  ;;  %v1368_v29 = vpop.f32.mrb[40].mxu1 }
 0x28b   : > { %v1296_v58 = vadd.f32 %v1295_v57, %v2672_v56  ;;  %v1369_v5 = vadd.f32 %v1368_v29, %v2672_v56  ;;  %v1297_v59 = vpop.f32.mrb[41].mxu0  ;;  %v1370_v62 = vpop.f32.mrb[41].mxu1 }
 0x28c   : > { %v1298_v63 = vadd.f32 %v1297_v59, %v2672_v56  ;;  %v1371_v0 = vadd.f32 %v1370_v62, %v2672_v56  ;;  %v1299_v1 = vpop.f32.mrb[42].mxu0  ;;  %v1372_v2 = vpop.f32.mrb[42].mxu1 }
 0x28d   : > { %v1565_v7 = vmax.f32 %v1296_v58, 0.0  ;;  %v1567_v10 = vmax.f32 %v1369_v5, 0.0  ;;  %v1300_v8 = vadd.f32 %v1299_v1, %v2670_v55  ;;  %v1373_v11 = vadd.f32 %v1372_v2, %v2670_v55  ;;  %v1301_v32 = vpop.f32.mrb[43].mxu0  ;;  %v1374_v12 = vpop.f32.mrb[43].mxu1 }
 0x28e   : > { %v1566_v13 = vmax.f32 %v1298_v63, 0.0  ;;  %v1568_v14 = vmax.f32 %v1371_v0, 0.0  ;;  %v1302_v9 = vadd.f32 %v1301_v32, %v2670_v55  ;;  %v1375_v15 = vadd.f32 %v1374_v12, %v2670_v55 }
 0x28f   : > { %1629 = vst [vmem:[%s2644_s17 + $0x100] sm:$0xff] %v1565_v7  ;;  %1631 = vst [vmem:[%s2644_s17 + $0x110] sm:$0xff] %v1567_v10  ;;  %v1573_v16 = vmax.f32 %v1300_v8, 0.0  ;;  %v1575_v30 = vmax.f32 %v1373_v11, 0.0 }
 0x290   : > { %1630 = vst [vmem:[%s2644_s17 + $0x108] sm:$0xff] %v1566_v13  ;;  %1632 = vst [vmem:[%s2644_s17 + $0x118] sm:$0xff] %v1568_v14  ;;  %v1574_v17 = vmax.f32 %v1302_v9, 0.0  ;;  %v1576_v18 = vmax.f32 %v1375_v15, 0.0 }
 0x291   : > { %1637 = vst [vmem:[%s2644_s17 + $0x140] sm:$0xff] %v1573_v16  ;;  %1639 = vst [vmem:[%s2644_s17 + $0x150] sm:$0xff] %v1575_v30 }
 0x292   : > { %1638 = vst [vmem:[%s2644_s17 + $0x148] sm:$0xff] %v1574_v17  ;;  %1640 = vst [vmem:[%s2644_s17 + $0x158] sm:$0xff] %v1576_v18  ;;  %v1305_v21 = vpop.f32.mrb[44].mxu0  ;;  %v1378_v22 = vpop.f32.mrb[44].mxu1 }
 0x293   : > { %v1306_v23 = vadd.f32 %v1305_v21, %v2692_v20  ;;  %v1379_v24 = vadd.f32 %v1378_v22, %v2692_v20  ;;  %v1307_v25 = vpop.f32.mrb[45].mxu0  ;;  %v1380_v26 = vpop.f32.mrb[45].mxu1 }
 0x294   : > { %v1308_v27 = vadd.f32 %v1307_v25, %v2692_v20  ;;  %v1381_v28 = vadd.f32 %v1380_v26, %v2692_v20  ;;  %v1309_v34 = vpop.f32.mrb[46].mxu0  ;;  %v1382_v35 = vpop.f32.mrb[46].mxu1 }
 0x295   : > { %v1581_v36 = vmax.f32 %v1306_v23, 0.0  ;;  %v1583_v4 = vmax.f32 %v1379_v24, 0.0  ;;  %v1310_v37 = vadd.f32 %v1309_v34, %v2690_v19  ;;  %v1383_v38 = vadd.f32 %v1382_v35, %v2690_v19  ;;  %v1311_v39 = vpop.f32.mrb[47].mxu0  ;;  %v1384_v40 = vpop.f32.mrb[47].mxu1 }
 0x296   : > { %v1582_v41 = vmax.f32 %v1308_v27, 0.0  ;;  %v1584_v42 = vmax.f32 %v1381_v28, 0.0  ;;  %v1312_v43 = vadd.f32 %v1311_v39, %v2690_v19  ;;  %v1385_v44 = vadd.f32 %v1384_v40, %v2690_v19 }
 0x297   : > { %1645 = vst [vmem:[%s2644_s17 + $0x180] sm:$0xff] %v1581_v36  ;;  %1647 = vst [vmem:[%s2644_s17 + $0x190] sm:$0xff] %v1583_v4  ;;  %v1589_v45 = vmax.f32 %v1310_v37, 0.0  ;;  %v1591_v61 = vmax.f32 %v1383_v38, 0.0 }
 0x298   : > { %1646 = vst [vmem:[%s2644_s17 + $0x188] sm:$0xff] %v1582_v41  ;;  %1648 = vst [vmem:[%s2644_s17 + $0x198] sm:$0xff] %v1584_v42  ;;  %v1590_v3 = vmax.f32 %v1312_v43, 0.0  ;;  %v1592_v46 = vmax.f32 %v1385_v44, 0.0 }
 0x299   : > { %1653 = vst [vmem:[%s2644_s17 + $0x1c0] sm:$0xff] %v1589_v45  ;;  %1655 = vst [vmem:[%s2644_s17 + $0x1d0] sm:$0xff] %v1591_v61 }
 0x29a   : > { %1654 = vst [vmem:[%s2644_s17 + $0x1c8] sm:$0xff] %v1590_v3  ;;  %1656 = vst [vmem:[%s2644_s17 + $0x1d8] sm:$0xff] %v1592_v46 }
 0x2ba   : > { %v1421_v47 = vpop.f32.mrb[48].mxu0  ;;  %v1494_v48 = vpop.f32.mrb[48].mxu1 }
 0x2bb   : > { %v1422_v49 = vadd.f32 %v1421_v47, %v2632_v6  ;;  %v1495_v50 = vadd.f32 %v1494_v48, %v2632_v6  ;;  %v1423_v51 = vpop.f32.mrb[49].mxu0  ;;  %v1496_v52 = vpop.f32.mrb[49].mxu1 }
 0x2bc   : > { %v1424_v53 = vadd.f32 %v1423_v51, %v2632_v6  ;;  %v1497_v54 = vadd.f32 %v1496_v52, %v2632_v6  ;;  %v1425_v57 = vpop.f32.mrb[50].mxu0  ;;  %v1498_v29 = vpop.f32.mrb[50].mxu1 }
 0x2bd   : > { %v1537_v58 = vmax.f32 %v1422_v49, 0.0  ;;  %v1539_v5 = vmax.f32 %v1495_v50, 0.0  ;;  %v1426_v59 = vadd.f32 %v1425_v57, %v2630_v31  ;;  %v1499_v62 = vadd.f32 %v1498_v29, %v2630_v31  ;;  %v1427_v63 = vpop.f32.mrb[51].mxu0  ;;  %v1500_v0 = vpop.f32.mrb[51].mxu1 }
 0x2be   : > { %v1538_v1 = vmax.f32 %v1424_v53, 0.0  ;;  %v1540_v2 = vmax.f32 %v1497_v54, 0.0  ;;  %v1428_v6 = vadd.f32 %v1427_v63, %v2630_v31  ;;  %v1501_v7 = vadd.f32 %v1500_v0, %v2630_v31 }
 0x2bf   : > { %1601 = vst [vmem:[%s2644_s17 + $0x20] sm:$0xff] %v1537_v58  ;;  %1603 = vst [vmem:[%s2644_s17 + $0x30] sm:$0xff] %v1539_v5  ;;  %v1545_v10 = vmax.f32 %v1426_v59, 0.0  ;;  %v1547_v8 = vmax.f32 %v1499_v62, 0.0 }
 0x2c0   : > { %1602 = vst [vmem:[%s2644_s17 + $0x28] sm:$0xff] %v1538_v1  ;;  %1604 = vst [vmem:[%s2644_s17 + $0x38] sm:$0xff] %v1540_v2  ;;  %v1546_v11 = vmax.f32 %v1428_v6, 0.0  ;;  %v1548_v32 = vmax.f32 %v1501_v7, 0.0 }
 0x2c1   : > { %1609 = vst [vmem:[%s2644_s17 + $0x60] sm:$0xff] %v1545_v10  ;;  %1611 = vst [vmem:[%s2644_s17 + $0x70] sm:$0xff] %v1547_v8 }
 0x2c2   : > { %1610 = vst [vmem:[%s2644_s17 + $0x68] sm:$0xff] %v1546_v11  ;;  %1612 = vst [vmem:[%s2644_s17 + $0x78] sm:$0xff] %v1548_v32  ;;  %v1431_v12 = vpop.f32.mrb[52].mxu0  ;;  %v1504_v13 = vpop.f32.mrb[52].mxu1 }
 0x2c3   : > { %v1432_v14 = vadd.f32 %v1431_v12, %v2652_v60  ;;  %v1505_v9 = vadd.f32 %v1504_v13, %v2652_v60  ;;  %v1433_v15 = vpop.f32.mrb[53].mxu0  ;;  %v1506_v31 = vpop.f32.mrb[53].mxu1 }
 0x2c4   : > { %v1434_v16 = vadd.f32 %v1433_v15, %v2652_v60  ;;  %v1507_v30 = vadd.f32 %v1506_v31, %v2652_v60  ;;  %v1435_v17 = vpop.f32.mrb[54].mxu0  ;;  %v1508_v18 = vpop.f32.mrb[54].mxu1 }
 0x2c5   : > { %v1553_v21 = vmax.f32 %v1432_v14, 0.0  ;;  %v1555_v22 = vmax.f32 %v1505_v9, 0.0  ;;  %v1436_v23 = vadd.f32 %v1435_v17, %v2650_v33  ;;  %v1509_v24 = vadd.f32 %v1508_v18, %v2650_v33  ;;  %v1437_v25 = vpop.f32.mrb[55].mxu0  ;;  %v1510_v26 = vpop.f32.mrb[55].mxu1 }
 0x2c6   : > { %v1554_v27 = vmax.f32 %v1434_v16, 0.0  ;;  %v1556_v28 = vmax.f32 %v1507_v30, 0.0  ;;  %v1438_v60 = vadd.f32 %v1437_v25, %v2650_v33  ;;  %v1511_v34 = vadd.f32 %v1510_v26, %v2650_v33 }
 0x2c7   : > { %1617 = vst [vmem:[%s2644_s17 + $0xa0] sm:$0xff] %v1553_v21  ;;  %1619 = vst [vmem:[%s2644_s17 + $0xb0] sm:$0xff] %v1555_v22  ;;  %v1561_v35 = vmax.f32 %v1436_v23, 0.0  ;;  %v1563_v36 = vmax.f32 %v1509_v24, 0.0 }
 0x2c8   : > { %1618 = vst [vmem:[%s2644_s17 + $0xa8] sm:$0xff] %v1554_v27  ;;  %1620 = vst [vmem:[%s2644_s17 + $0xb8] sm:$0xff] %v1556_v28  ;;  %v1562_v4 = vmax.f32 %v1438_v60, 0.0  ;;  %v1564_v37 = vmax.f32 %v1511_v34, 0.0 }
 0x2c9   : > { %1625 = vst [vmem:[%s2644_s17 + $0xe0] sm:$0xff] %v1561_v35  ;;  %1627 = vst [vmem:[%s2644_s17 + $0xf0] sm:$0xff] %v1563_v36 }
 0x2ca   : > { %1626 = vst [vmem:[%s2644_s17 + $0xe8] sm:$0xff] %v1562_v4  ;;  %1628 = vst [vmem:[%s2644_s17 + $0xf8] sm:$0xff] %v1564_v37  ;;  %v1441_v38 = vpop.f32.mrb[56].mxu0  ;;  %v1514_v39 = vpop.f32.mrb[56].mxu1 }
 0x2cb   : > { %v1442_v40 = vadd.f32 %v1441_v38, %v2672_v56  ;;  %v1515_v41 = vadd.f32 %v1514_v39, %v2672_v56  ;;  %v1443_v42 = vpop.f32.mrb[57].mxu0  ;;  %v1516_v33 = vpop.f32.mrb[57].mxu1 }
 0x2cc   : > { %v1444_v43 = vadd.f32 %v1443_v42, %v2672_v56  ;;  %v1517_v44 = vadd.f32 %v1516_v33, %v2672_v56  ;;  %v1445_v45 = vpop.f32.mrb[58].mxu0  ;;  %v1518_v61 = vpop.f32.mrb[58].mxu1 }
 0x2cd   : > { %v1569_v3 = vmax.f32 %v1442_v40, 0.0  ;;  %v1571_v46 = vmax.f32 %v1515_v41, 0.0  ;;  %v1446_v47 = vadd.f32 %v1445_v45, %v2670_v55  ;;  %v1519_v48 = vadd.f32 %v1518_v61, %v2670_v55  ;;  %v1447_v49 = vpop.f32.mrb[59].mxu0  ;;  %v1520_v50 = vpop.f32.mrb[59].mxu1 }
 0x2ce   : > { %v1570_v51 = vmax.f32 %v1444_v43, 0.0  ;;  %v1572_v52 = vmax.f32 %v1517_v44, 0.0  ;;  %v1448_v56 = vadd.f32 %v1447_v49, %v2670_v55  ;;  %v1521_v53 = vadd.f32 %v1520_v50, %v2670_v55 }
 0x2cf   : > { %1633 = vst [vmem:[%s2644_s17 + $0x120] sm:$0xff] %v1569_v3  ;;  %1635 = vst [vmem:[%s2644_s17 + $0x130] sm:$0xff] %v1571_v46  ;;  %v1577_v54 = vmax.f32 %v1446_v47, 0.0  ;;  %v1579_v57 = vmax.f32 %v1519_v48, 0.0 }
 0x2d0   : > { %1634 = vst [vmem:[%s2644_s17 + $0x128] sm:$0xff] %v1570_v51  ;;  %1636 = vst [vmem:[%s2644_s17 + $0x138] sm:$0xff] %v1572_v52  ;;  %v1578_v29 = vmax.f32 %v1448_v56, 0.0  ;;  %v1580_v58 = vmax.f32 %v1521_v53, 0.0 }
 0x2d1   : > { %1641 = vst [vmem:[%s2644_s17 + $0x160] sm:$0xff] %v1577_v54  ;;  %1643 = vst [vmem:[%s2644_s17 + $0x170] sm:$0xff] %v1579_v57 }
 0x2d2   : > { %1642 = vst [vmem:[%s2644_s17 + $0x168] sm:$0xff] %v1578_v29  ;;  %1644 = vst [vmem:[%s2644_s17 + $0x178] sm:$0xff] %v1580_v58  ;;  %v1451_v5 = vpop.f32.mrb[60].mxu0  ;;  %v1524_v59 = vpop.f32.mrb[60].mxu1 }
 0x2d3   : > { %v1452_v62 = vadd.f32 %v1451_v5, %v2692_v20  ;;  %v1525_v55 = vadd.f32 %v1524_v59, %v2692_v20  ;;  %v1453_v63 = vpop.f32.mrb[61].mxu0  ;;  %v1526_v0 = vpop.f32.mrb[61].mxu1 }
 0x2d4   : > { %v1454_v1 = vadd.f32 %v1453_v63, %v2692_v20  ;;  %v1527_v2 = vadd.f32 %v1526_v0, %v2692_v20  ;;  %v1455_v6 = vpop.f32.mrb[62].mxu0  ;;  %v1528_v7 = vpop.f32.mrb[62].mxu1 }
 0x2d5   : > { %v1585_v10 = vmax.f32 %v1452_v62, 0.0  ;;  %v1587_v8 = vmax.f32 %v1525_v55, 0.0  ;;  %v1456_v11 = vadd.f32 %v1455_v6, %v2690_v19  ;;  %v1529_v32 = vadd.f32 %v1528_v7, %v2690_v19  ;;  %v1457_v12 = vpop.f32.mrb[63].mxu0  ;;  %v1530_v13 = vpop.f32.mrb[63].mxu1 }
 0x2d6   : > { %v1586_v14 = vmax.f32 %v1454_v1, 0.0  ;;  %v1588_v20 = vmax.f32 %v1527_v2, 0.0  ;;  %v1458_v9 = vadd.f32 %v1457_v12, %v2690_v19  ;;  %v1531_v15 = vadd.f32 %v1530_v13, %v2690_v19 }
 0x2d7   : > { %1649 = vst [vmem:[%s2644_s17 + $0x1a0] sm:$0xff] %v1585_v10  ;;  %1651 = vst [vmem:[%s2644_s17 + $0x1b0] sm:$0xff] %v1587_v8  ;;  %v1593_v31 = vmax.f32 %v1456_v11, 0.0  ;;  %v1595_v16 = vmax.f32 %v1529_v32, 0.0 }
 0x2d8   : > { %1650 = vst [vmem:[%s2644_s17 + $0x1a8] sm:$0xff] %v1586_v14  ;;  %1652 = vst [vmem:[%s2644_s17 + $0x1b8] sm:$0xff] %v1588_v20  ;;  %v1594_v30 = vmax.f32 %v1458_v9, 0.0  ;;  %v1596_v17 = vmax.f32 %v1531_v15, 0.0 }
 0x2d9   : > { %1657 = vst [vmem:[%s2644_s17 + $0x1e0] sm:$0xff] %v1593_v31  ;;  %1659 = vst [vmem:[%s2644_s17 + $0x1f0] sm:$0xff] %v1595_v16 }
 0x2da   : > { %1658 = vst [vmem:[%s2644_s17 + $0x1e8] sm:$0xff] %v1594_v30  ;;  %1660 = vst [vmem:[%s2644_s17 + $0x1f8] sm:$0xff] %v1596_v17 }
 0x2db   : > { %2061 = shalt.err (!%p2058_p5)
}
 0x2dc   : > { %s2062_s12 = scalar_lea.hbm %s2777_s29, 8192  ;;  %s2066_s15 = scalar_lea.hbm %s2840_s5, 16384 }
 0x2dd   : > { %p2063_p6 = scmp.ne.s32.totalorder %s2777_s29, %s2062_s12  ;;  %p2067_p10 = scmp.lt.u32.totalorder %s2777_s29, %s2840_s5 }
 0x2de   : > { %p2068_p11 = scmp.lt.u32.totalorder %s2066_s15, %s2062_s12  ;;  %p2070_p13 = scmp.lt.u32.totalorder %s2062_s12, %s2777_s29 }
 0x2df   : > { %p2064_p7 = pnand %p2063_p6, %p2203_p4 }
 0x2e0   : > { %p2069_p12 = por %p2068_p11, %p2067_p10 }
 0x2e1   : > { %p2065_p9 = pneg %p2064_p7 }
 0x2e2   : > { %p2071_p0 = por %p2070_p13, %p2069_p12 }
 0x2e4   : > { %p2072_p1 = pnand %p2071_p0, %p2065_p9 }
 0x2e6   : > { %2075 = shalt.err (!%p2072_p1)
}
 0x2e7   : > { %s2131_s24 = smov 1024   ;;  %s2132_s21 = smov 64  }
 0x2e8   : > { %1811 = dma.vmem_to_hbm [thread:$0]  (%p2203_p4), %s2779_s25, 8192, %s2777_s29, %s2789_s7, %s2131_s24, %s2131_s24, %s2132_s21  }
 0x2e9 PF: > { %p1817_p2 = scmp.ge.s32.totalorder %s2126_s23, 2  ;;  %s1692_s27 = sand.u32 1, %s2106_s18  }
 0x2ea   : > { %s1693_s8 = scalar_lea.sflag [#allocation3], %s1692_s27 }
 0x2eb   : > { %p1814_p3 = pnand %p1817_p2, %p2210_p8 }
 0x2ed   : > { %2101 = dma.done.wait (!%p1814_p3), %s1693_s8, 8192  }
 0x2ee   : > { %2103 = vsyncadd (!%p1814_p3), %s1693_s8, 4294959104  ;;  %s18_s23 = sadd.s32 1, %s2126_s23   ;;  %s2843_s18 = smov %s2110_s19 }
 0x2ef   : > { %p15_p5 = scmp.ge.s32.totalorder %s18_s23, 4   ;;  %s2844_s19 = smov %s2114_s20 }
 0x2f0   : > { %s2845_s20 = smov %s2216_s6  ;;  %s2846_s21 = smov %s2122_s22 }
 0x2f1   : > { %s2847_s22 = smov %s2849_s26  ;;  %17 = sbr.rel (!%p15_p5) target bundleno = 4 (0x4), region = 75 }
 0x2f8   :  { %1698 = vsyncpa [#allocation3], 1 }
 0x2f9   :  { %1700 = vsyncpa [#allocation3 + $0x1], 1 }

</bundles_post_ra>
